<compile_context>
chip_gen: v5e
topology: v5e:2x2
jax: 0.10.0
libtpu: 0.0.40
codegen_flags: <defaults>
</compile_context>

<pallas_src>
import jax
import jax.numpy as jnp
import numpy as np
from jax.experimental import pallas as pl
from jax.experimental.pallas import tpu as pltpu

_LANES = 512            # lane width of the SoA layout (multiple of 128) -> wide unmasked vst
_MAX_BLOCK_ROWS = 1024  # 1024 * 512 * 4 B = 2 MiB per array per grid step
_MIN_GRID_STEPS = 4     # keep >= 2 steps per TensorCore on v7x whenever N allows


def _round_up(x: int, m: int) -> int:
    return ((x + m - 1) // m) * m


def _choose_block_rows(rows: int) -> int:
    """Largest block (<= _MAX_BLOCK_ROWS, multiple of 8) that still leaves
    >= _MIN_GRID_STEPS grid steps, so the ~0.35us per-step overhead is amortized
    without starving the v7x megacore split for mid-size N."""
    if rows <= 8:
        return 8
    target = _round_up(pl.cdiv(rows, _MIN_GRID_STEPS), 8)
    return max(8, min(_MAX_BLOCK_ROWS, target))


def _driving_term_kernel(x_ref, y_ref, o_ref):
    # x_ref, y_ref, o_ref: (block_rows, _LANES) float32, fully lane/sublane dense.
    # On v5e/v6e this is HBM-bound, so jnp.sin's generic range reduction hides
    # under DMA time.
    # TODO(synk): on v7x (~3.2 TB/s HBM) a short odd minimax polynomial for
    # sin(pi*u) on a known coordinate domain would lift the VALU cap; jnp.sin is
    # kept because the input domain is not guaranteed by the module.
    pi = jnp.float32(np.pi)
    o_ref[...] = jnp.sin(pi * x_ref[...]) * jnp.sin(pi * y_ref[...])


def driving_term(coords: jax.Array) -> jax.Array:
    """coords: (N, 2) -> (N,), matching the PyTorch module (float32 compute)."""
    assert coords.ndim == 2 and coords.shape[1] == 2
    n = coords.shape[0]

    rows = max(pl.cdiv(n, _LANES), 1)
    block_rows = _choose_block_rows(rows)
    rows_pad = _round_up(rows, block_rows)
    n_pad = rows_pad * _LANES

    # SoA split: one strided slice + pad + reshape per channel. With
    # allow_input_fusion below, XLA may fuse these producers directly into the
    # pallas_call inputs instead of round-tripping x/y through HBM.
    x = jnp.pad(coords[:, 0].astype(jnp.float32), (0, n_pad - n)).reshape(rows_pad, _LANES)
    y = jnp.pad(coords[:, 1].astype(jnp.float32), (0, n_pad - n)).reshape(rows_pad, _LANES)

    out = pl.pallas_call(
        _driving_term_kernel,
        out_shape=jax.ShapeDtypeStruct((rows_pad, _LANES), jnp.float32),
        grid_spec=pltpu.PrefetchScalarGridSpec(
            num_scalar_prefetch=0,
            grid=(rows_pad // block_rows,),
            in_specs=[
                pl.BlockSpec((block_rows, _LANES), lambda i: (i, 0)),
                pl.BlockSpec((block_rows, _LANES), lambda i: (i, 0)),
            ],
            out_specs=pl.BlockSpec((block_rows, _LANES), lambda i: (i, 0)),
        ),
        compiler_params=pltpu.CompilerParams(
            dimension_semantics=("parallel",),       # grid splits across v7x TCs
            vmem_limit_bytes=32 << 20,               # headroom on v5e (16 MiB default) and v7x
            allow_input_fusion=[True, True],         # fuse slice/pad/reshape producers
        ),
    )(x, y)

    # Only the fixups the (N,) contract requires; reshape is metadata-only and
    # the slice/astype fuse with downstream consumers under jit.
    result = out.reshape(-1)
    if n_pad != n:
        result = result[:n]
    if result.dtype != coords.dtype:
        result = result.astype(coords.dtype)
    return result


if __name__ == "__main__":
    key = jax.random.PRNGKey(0)
    pi32 = jnp.float32(np.pi)

    # Small demo shape consistent with the module's (N, 2) Coords input.
    N = 8
    coords = jax.random.uniform(key, (N, 2), dtype=jnp.float32)
    result = driving_term(coords)
    jax.block_until_ready(result)
    ref = jnp.sin(pi32 * coords[:, 0]) * jnp.sin(pi32 * coords[:, 1])
    assert result.shape == (N,)
    assert jnp.allclose(result, ref, atol=1e-5, rtol=1e-5)

    # Exercises padding / multi-row layout.
    N2 = 2048
    coords2 = jax.random.uniform(jax.random.PRNGKey(1), (N2, 2), dtype=jnp.float32)
    result2 = driving_term(coords2)
    jax.block_until_ready(result2)
    ref2 = jnp.sin(pi32 * coords2[:, 0]) * jnp.sin(pi32 * coords2[:, 1])
    assert result2.shape == (N2,)
    assert jnp.allclose(result2, ref2, atol=1e-5, rtol=1e-5)

    # Non-multiple-of-LANES size that yields a multi-step grid (adaptive block).
    N3 = 5000
    coords3 = jax.random.uniform(jax.random.PRNGKey(2), (N3, 2), dtype=jnp.float32)
    result3 = driving_term(coords3)
    jax.block_until_ready(result3)
    ref3 = jnp.sin(pi32 * coords3[:, 0]) * jnp.sin(pi32 * coords3[:, 1])
    assert result3.shape == (N3,)
    assert jnp.allclose(result3, ref3, atol=1e-5, rtol=1e-5)

    print("KERNEL_OK")
</pallas_src>

<mosaic_0001>
module attributes {stable_mosaic.version = 11 : i64} {
  func.func @_driving_term_kernel(%arg0: i32, %arg1: memref<8x512xf32, #tpu.memory_space<vmem>>, %arg2: memref<8x512xf32, #tpu.memory_space<vmem>>, %arg3: memref<8x512xf32, #tpu.memory_space<vmem>>) attributes {dimension_semantics = [#tpu.dimension_semantics<parallel>], iteration_bounds = array<i64: 1>, scalar_prefetch = 0 : i64, scratch_operands = 0 : i64, tpu.core_type = #tpu.core_type<tc>, window_params = [{transform_indices = @transform_0, window_bounds = array<i64: 8, 512>}, {transform_indices = @transform_1, window_bounds = array<i64: 8, 512>}, {transform_indices = @transform_2, window_bounds = array<i64: 8, 512>}]} {
    %c0 = arith.constant 0 : index
    %c0_0 = arith.constant 0 : index
    %0 = vector.load %arg1[%c0, %c0_0] : memref<8x512xf32, #tpu.memory_space<vmem>>, vector<8x512xf32>
    %cst = arith.constant 3.14159274 : f32
    %1 = vector.broadcast %cst : f32 to vector<8x512xf32>
    %2 = arith.mulf %1, %0 : vector<8x512xf32>
    %3 = math.sin %2 : vector<8x512xf32>
    %c0_1 = arith.constant 0 : index
    %c0_2 = arith.constant 0 : index
    %4 = vector.load %arg2[%c0_1, %c0_2] : memref<8x512xf32, #tpu.memory_space<vmem>>, vector<8x512xf32>
    %cst_3 = arith.constant 3.14159274 : f32
    %5 = vector.broadcast %cst_3 : f32 to vector<8x512xf32>
    %6 = arith.mulf %5, %4 : vector<8x512xf32>
    %7 = math.sin %6 : vector<8x512xf32>
    %8 = arith.mulf %3, %7 : vector<8x512xf32>
    %c0_4 = arith.constant 0 : index
    %c0_5 = arith.constant 0 : index
    %9 = vector.load %arg3[%c0_4, %c0_5] : memref<8x512xf32, #tpu.memory_space<vmem>>, vector<8x512xf32>
    tpu.vector_store %arg3[%c0_4, %c0_5], %8 {strides = array<i32>} : memref<8x512xf32, #tpu.memory_space<vmem>>, vector<8x512xf32>,
    return
  }
  func.func @transform_0(%arg0: i32) -> (i32, i32) {
    %c0_i32 = arith.constant 0 : i32
    %c0_i32_0 = arith.constant 0 : i32
    return %arg0, %c0_i32 : i32, i32
  }
  func.func @transform_1(%arg0: i32) -> (i32, i32) {
    %c0_i32 = arith.constant 0 : i32
    %c0_i32_0 = arith.constant 0 : i32
    return %arg0, %c0_i32 : i32, i32
  }
  func.func @transform_2(%arg0: i32) -> (i32, i32) {
    %c0_i32 = arith.constant 0 : i32
    %c0_i32_0 = arith.constant 0 : i32
    return %arg0, %c0_i32 : i32, i32
  }
}

</mosaic_0001>

<bundles_post_ra>
// kernel: tpu_custom_call.1
= control target key start
LH: loop header
LB: loop body
LE: loop exit
PB: predicated region body
PF: predicated region fallthrough
CT: control target
= control target key end

     0   :  { %7 = vsyncpa [#allocation3], 0  ;;  %s2633_s0 = inlined_call_operand.hbm [shape: f32[8,512], index: 0, kind: input, shape index: {}]   ;;  %s2634_s1 = inlined_call_operand.hbm [shape: f32[8,512], index: 1, kind: input, shape index: {}]   ;;  %s2635_s2 = inlined_call_operand.hbm [shape: f32[8,512], index: 2, kind: output, shape index: {}]  }
   0x1   :  { %8 = vsyncpa [#allocation6], 0 }
   0x2   :  { %9 = vsyncpa [#allocation4], 0  ;;  %s15_s11 = sshll.u32 %s2633_s0, 4  ;;  %s1434_s12 = smov [#allocation2]   ;;  %s16_s11 = int_to_ptr.hbm [resolvable:$true] %s15_s11 }
   0x3   :  { %s17_s13 = sshll.u32 %s1434_s12, 4  ;;  %s26_s16 = sshll.u32 %s2634_s1, 4  ;;  %s18_s13 = int_to_ptr.vmem [resolvable:$true] %s17_s13  ;;  %s27_s16 = int_to_ptr.hbm [resolvable:$true] %s26_s16 }
   0x4   :  { %20 = dma.hbm_to_vmem [thread:$0]  %s16_s11, 512, %s18_s13, [#allocation3]  }
   0x5   :  { %s1435_s17 = smov [#allocation5]  }
   0x6   :  { %s28_s18 = sshll.u32 %s1435_s17, 4  ;;  %s29_s18 = int_to_ptr.vmem [resolvable:$true] %s28_s18 }
   0x7   :  { %31 = dma.hbm_to_vmem [thread:$0]  %s27_s16, 512, %s29_s18, [#allocation6]  }
   0x8   :  { %1428 = dma.done.wait [#allocation3], 512  }
   0x9   :  { %1429 = vsyncadd [#allocation3], 4294966784 }
   0xa   :  { %1430 = dma.done.wait [#allocation6], 512  }
   0xb   :  { %1431 = vsyncadd [#allocation6], 4294966784  ;;  %v40_v0 = vld [vmem:[#allocation2] sm:$0xff]  ;;  %v41_v1 = vld [vmem:[#allocation2 + $0x8] sm:$0xff]  ;;  %v2649_v29 = vmov 683565275  }
   0xc   :  { %v1465_v2 = vmul.f32 3.1415927, %v40_v0  ;;  %v1467_v3 = vmul.f32 3.1415927, %v41_v1  ;;  %v42_v4 = vld [vmem:[#allocation2 + $0x10] sm:$0xff]  ;;  %s1443_s0 = smov [#allocation7]  }
   0xd   :  { %v1475_v11 = vmul.f32 3.1415927, %v42_v4  ;;  %v2647_v31 = vmov 2475754826   ;;  %v2645_v33 = vmov 2131351028  }
   0xe   :  { %2668 = vst [vmem:[#allocation11_spill] sm:$0xff] %v1465_v2  ;;  %v48_v5 = vand.u32 2147483647, %v1465_v2  ;;  %v51_v6 = vand.u32 2139095040, %v1465_v2  ;;  %v203_v7 = vand.u32 2147483647, %v1467_v3 }
   0xf   :  { %2669 = vst [vmem:[#allocation12_spill] sm:$0xff] %v1467_v3  ;;  %v206_v8 = vand.u32 2139095040, %v1467_v3  ;;  %v361_v19 = vand.u32 2139095040, %v1475_v11  ;;  %v2643_v35 = vmov 2102212464   ;;  %s1309_s1 = sshll.u32 %s1443_s0, 4  ;;  %s1310_s1 = int_to_ptr.vmem [resolvable:$true] %s1309_s1 }
  0x10   :  { %v52_v9 = vshrl.u32 %v51_v6, 23  ;;  %v55_v10 = vand.u32 8388607, %v48_v5  ;;  %2670 = vst [vmem:[#allocation13_spill] sm:$0xff] %v1475_v11  ;;  %v210_v16 = vand.u32 8388607, %v203_v7 }
  0x11   :  { %v207_v12 = vshrl.u32 %v206_v8, 23  ;;  %v1486_v27 = vshrl.u32 %v361_v19, 23  ;;  %v2641_v37 = vmov 920167782   ;;  %v2639_v46 = vmov 1326507024  }
  0x12   :  { %v1322_v13 = vadd.s32 4294967169, %v52_v9  ;;  %v56_v14 = vor.u32 8388608, %v55_v10  ;;  %v211_v22 = vor.u32 8388608, %v210_v16  ;;  %s1311_s21 = sshll.u32 %s2635_s2, 4  ;;  %s1312_s21 = int_to_ptr.hbm [resolvable:$true] %s1311_s21 }
  0x13   :  { %v1325_v15 = vadd.s32 4294967169, %v207_v12 }
  0x14   :  { %v58_v17 = vadd.s32 1, %v1322_v13  ;;  %v1480_v21 = vshll.u32 %v56_v14, 8  ;;  %v1494_v40 = vshll.u32 %v211_v22, 8 }
  0x15   :  { %v213_v18 = vadd.s32 1, %v1325_v15 }
  0x16   :  { %vm59_vm0 = vcmp.gt.s32.totalorder %v58_v17, 0  ;;  %v97_v39 = vand.u32 65535, %v1480_v21  ;;  %v98_v44 = vshrl.u32 %v1480_v21, 16 }
  0x17   :  { %v60_v20 = vsel %vm59_vm0, %v58_v17, 0  ;;  %vm214_vm1 = vcmp.gt.s32.totalorder %v213_v18, 0 }
  0x18   :  { %v62_v23 = vand.u32 31, %v60_v20  ;;  %v215_v24 = vsel %vm214_vm1, %v213_v18, 0  ;;  %v1482_v25 = vshrl.u32 %v60_v20, 5 }
  0x19   :  { %v1484_v26 = vand.u32 31, %v215_v24  ;;  %v1514_v57 = vshrl.u32 %v215_v24, 5 }
  0x1a   :  { %v63_v28 = vsub.s32 32, %v62_v23  ;;  %v65_v30 = vshll.u32 %v2649_v29, %v62_v23  ;;  %v68_v32 = vshll.u32 %v2647_v31, %v62_v23  ;;  %v71_v34 = vshll.u32 %v2645_v33, %v62_v23 }
  0x1b   :  { %v74_v36 = vshll.u32 %v2643_v35, %v62_v23  ;;  %v77_v38 = vshll.u32 %v2641_v37, %v62_v23  ;;  %vm80_vm2 = vcmp.lt.s32.totalorder %v1482_v25, 1  ;;  %vm83_vm3 = vcmp.lt.s32.totalorder %v1482_v25, 4 }
  0x1c   :  { %v66_v41 = vshrl.u32 %v2647_v31, %v63_v28  ;;  %v69_v42 = vshrl.u32 %v2645_v33, %v63_v28  ;;  %v72_v43 = vshrl.u32 %v2643_v35, %v63_v28  ;;  %v75_v45 = vshrl.u32 %v2641_v37, %v63_v28 }
  0x1d   :  { %v78_v47 = vshrl.u32 %v2639_v46, %v63_v28  ;;  %v1505_v51 = vsub.s32 32, %v1484_v26  ;;  %v64_v52 = vshrl.u32 %v2649_v29, %v63_v28  ;;  %vm82_vm4 = vcmp.lt.s32.totalorder %v1482_v25, 3 }
  0x1e   :  { %v67_v48 = vor.u32 %v66_v41, %v65_v30  ;;  %v70_v49 = vor.u32 %v69_v42, %v68_v32  ;;  %v73_v50 = vor.u32 %v72_v43, %v71_v34  ;;  %v76_v53 = vor.u32 %v75_v45, %v74_v36 }
  0x1f   :  { %v79_v54 = vor.u32 %v78_v47, %v77_v38  ;;  %vm81_vm5 = vcmp.lt.s32.totalorder %v1482_v25, 2  ;;  %v220_v60 = vshll.u32 %v2649_v29, %v1484_v26  ;;  %v223_v61 = vshll.u32 %v2647_v31, %v1484_v26 }
  0x20   :  { %v88_v55 = vsel %vm80_vm2, %v67_v48, %v70_v49  ;;  %v92_v56 = vsel %vm80_vm2, %v70_v49, %v73_v50  ;;  %v89_v58 = vsel %vm83_vm3, %v76_v53, 920167782  ;;  %v85_v62 = vsel %vm83_vm3, %v73_v50, 2102212464 }
  0x21   :  { %v93_v59 = vsel %vm83_vm3, %v79_v54, 1326507024  ;;  %v90_v63 = vsel %vm82_vm4, %v73_v50, %v89_v58  ;;  %v221_v1 = vshrl.u32 %v2647_v31, %v1505_v51  ;;  %v84_v4 = vsel %vm80_vm2, %v64_v52, %v67_v48 }
  0x22   :  { %v94_v0 = vsel %vm82_vm4, %v76_v53, %v93_v59  ;;  %v91_v6 = vsel %vm81_vm5, %v88_v55, %v90_v63  ;;  %v224_v9 = vshrl.u32 %v2645_v33, %v1505_v51  ;;  %v86_v15 = vsel %vm82_vm4, %v70_v49, %v85_v62 }
  0x23   :  { %v95_v8 = vsel %vm81_vm5, %v92_v56, %v94_v0  ;;  %v121_v13 = vand.u32 65535, %v91_v6  ;;  %v122_v14 = vshrl.u32 %v91_v6, 16  ;;  %v1542_v16 = vor.u32 %v221_v1, %v220_v60 }
  0x24   :  { %v99_v10 = vand.u32 65535, %v95_v8  ;;  %v100_v12 = vshrl.u32 %v95_v8, 16  ;;  %v1544_v17 = vor.u32 %v224_v9, %v223_v61  ;;  %v226_v18 = vshll.u32 %v2645_v33, %v1484_v26 }
  0x25   :  { %v227_v23 = vshrl.u32 %v2643_v35, %v1505_v51  ;;  %v123_v28 = vmul.u32 %v121_v13, %v97_v39  ;;  %v124_v30 = vmul.u32 %v122_v14, %v97_v39  ;;  %v125_v32 = vmul.u32 %v121_v13, %v98_v44 }
  0x26   :  { %v101_v19 = vmul.u32 %v99_v10, %v97_v39  ;;  %v102_v20 = vmul.u32 %v100_v12, %v97_v39  ;;  %v103_v22 = vmul.u32 %v99_v10, %v98_v44  ;;  %v104_v24 = vmul.u32 %v100_v12, %v98_v44 }
  0x27   :  { %v126_v41 = vmul.u32 %v122_v14, %v98_v44  ;;  %v127_v43 = vshll.u32 %v124_v30, 16  ;;  %v128_v45 = vshrl.u32 %v124_v30, 16  ;;  %v129_v47 = vshll.u32 %v125_v32, 16 }
  0x28   :  { %v105_v34 = vshll.u32 %v102_v20, 16  ;;  %v106_v36 = vshrl.u32 %v102_v20, 16  ;;  %v107_v38 = vshll.u32 %v103_v22, 16  ;;  %v108_v42 = vshrl.u32 %v103_v22, 16 }
  0x29   :  { %v130_v49 = vshrl.u32 %v125_v32, 16  ;;  %v229_v50 = vshll.u32 %v2643_v35, %v1484_v26  ;;  %v1442_v52 = vmov 0   ;;  %vm131_vm7 = vc.u32 %v123_v28, %v127_v43 }
  0x2a   :  { %vm109_vm6 = vc.u32 %v101_v19, %v105_v34  ;;  %v111_v48 = vadd.s32 %v105_v34, %v101_v19  ;;  %v133_v39 = vadd.s32 %v127_v43, %v123_v28  ;;  %v230_v54 = vshrl.u32 %v2641_v37, %v1505_v51 }
  0x2b   :  { %v110_v53 = vsel %vm109_vm6, 1, %v1442_v52  ;;  %v132_v44 = vsel %vm131_vm7, 1, %v1442_v52  ;;  %v232_v56 = vshll.u32 %v2641_v37, %v1484_v26  ;;  %v1559_v60 = vor.u32 %v227_v23, %v226_v18 }
  0x2c   :  { %v112_v55 = vadd.s32 %v110_v53, %v104_v24  ;;  %vm113_vm8 = vc.u32 %v111_v48, %v107_v38  ;;  %v134_v59 = vadd.s32 %v132_v44, %v126_v41  ;;  %vm135_vm9 = vc.u32 %v133_v39, %v129_v47 }
  0x2d   :  { %v114_v58 = vsel %vm113_vm8, 1, %v1442_v52  ;;  %v136_v62 = vsel %vm135_vm9, 1, %v1442_v52  ;;  %v231_v63 = vor.u32 %v230_v54, %v229_v50  ;;  %v233_v0 = vshrl.u32 %v2639_v46, %v1505_v51 }
  0x2e   :  { %v116_v61 = vadd.s32 %v114_v58, %v112_v55  ;;  %v1564_v1 = vadd.s32 %v133_v39, %v129_v47  ;;  %v138_v6 = vadd.s32 %v136_v62, %v134_v59  ;;  %vm235_vm10 = vcmp.lt.s32.totalorder %v1514_v57, 1 }
  0x2f   :  { %vm237_vm11 = vcmp.lt.s32.totalorder %v1514_v57, 3  ;;  %v234_v8 = vor.u32 %v233_v0, %v232_v56  ;;  %vm236_vm12 = vcmp.lt.s32.totalorder %v1514_v57, 2  ;;  %vm238_vm13 = vcmp.lt.s32.totalorder %v1514_v57, 4 }
  0x30   :  { %v117_v26 = vadd.s32 %v116_v61, %v106_v36  ;;  %v87_v9 = vsel %vm81_vm5, %v84_v4, %v86_v15  ;;  %v139_v10 = vadd.s32 %v138_v6, %v128_v45  ;;  %v243_v12 = vsel %vm235_vm10, %v1542_v16, %v1544_v17 }
  0x31   :  { %v244_v13 = vsel %vm238_vm13, %v231_v63, 920167782  ;;  %v247_v25 = vsel %vm235_vm10, %v1544_v17, %v1559_v60  ;;  %v252_v4 = vand.u32 65535, %v1494_v40  ;;  %v248_v20 = vsel %vm238_vm13, %v234_v8, 1326507024 }
  0x32   :  { %v1578_v14 = vadd.s32 %v117_v26, %v108_v42  ;;  %v245_v18 = vsel %vm237_vm11, %v1559_v60, %v244_v13  ;;  %v140_v15 = vadd.s32 %v139_v10, %v130_v49  ;;  %v253_v22 = vshrl.u32 %v1494_v40, 16 }
  0x33   :  { %v246_v19 = vsel %vm236_vm12, %v243_v12, %v245_v18  ;;  %v141_v23 = vmul.u32 %v1480_v21, %v87_v9  ;;  %v249_v24 = vsel %vm237_vm11, %v231_v63, %v248_v20  ;;  %v1328_v36 = vadd.s32 4294967169, %v1486_v27 }
  0x34   :  { %vm143_vm14 = vc.u32 %v1578_v14, %v1564_v1  ;;  %v276_v28 = vand.u32 65535, %v246_v19  ;;  %v144_v30 = vadd.s32 1, %v140_v15  ;;  %v250_v32 = vsel %vm236_vm12, %v247_v25, %v249_v24 }
  0x35   :  { %v277_v34 = vshrl.u32 %v246_v19, 16  ;;  %v254_v38 = vand.u32 65535, %v250_v32  ;;  %v255_v41 = vshrl.u32 %v250_v32, 16  ;;  %v368_v39 = vadd.s32 1, %v1328_v36 }
  0x36   :  { %v145_v42 = vsel %vm143_vm14, %v144_v30, %v140_v15  ;;  %v280_v45 = vmul.u32 %v276_v28, %v253_v22  ;;  %v278_v49 = vmul.u32 %v276_v28, %v252_v4  ;;  %v219_v19 = vshrl.u32 %v2649_v29, %v1505_v51 }
  0x37   :  { %v279_v43 = vmul.u32 %v277_v34, %v252_v4  ;;  %v146_v21 = vadd.s32 %v145_v42, %v141_v23  ;;  %v256_v47 = vmul.u32 %v254_v38, %v252_v4  ;;  %v257_v48 = vmul.u32 %v255_v41, %v252_v4 }
  0x38   :  { %v258_v50 = vmul.u32 %v254_v38, %v253_v22  ;;  %v259_v55 = vmul.u32 %v255_v41, %v253_v22  ;;  %v281_v58 = vmul.u32 %v277_v34, %v253_v22  ;;  %v284_v59 = vshll.u32 %v280_v45, 16 }
  0x39   :  { %v282_v53 = vshll.u32 %v279_v43, 16  ;;  %v147_v54 = vadd.s32 536870912, %v146_v21  ;;  %v260_v44 = vshll.u32 %v257_v48, 16  ;;  %vm369_vm1 = vcmp.gt.s32.totalorder %v368_v39, 0 }
  0x3a   :  { %v262_v56 = vshll.u32 %v258_v50, 16  ;;  %v261_v6 = vshrl.u32 %v257_v48, 16  ;;  %v283_v8 = vshrl.u32 %v279_v43, 16  ;;  %v285_v25 = vshrl.u32 %v280_v45, 16 }
  0x3b   :  { %v1601_v61 = vshrl.u32 %v147_v54, 30  ;;  %vm264_vm15 = vc.u32 %v256_v47, %v260_v44  ;;  %v266_v27 = vadd.s32 %v260_v44, %v256_v47  ;;  %vm286_vm0 = vc.u32 %v278_v49, %v282_v53 }
  0x3c   :  { %v265_v62 = vsel %vm264_vm15, 1, %v1442_v52  ;;  %v287_v63 = vsel %vm286_vm0, 1, %v1442_v52  ;;  %v288_v0 = vadd.s32 %v282_v53, %v278_v49  ;;  %v370_v15 = vsel %vm369_vm1, %v368_v39, 0 }
  0x3d   :  { %v267_v26 = vadd.s32 %v265_v62, %v259_v55  ;;  %vm268_vm2 = vc.u32 %v266_v27, %v262_v56  ;;  %v149_v9 = vshll.u32 %v1601_v61, 30  ;;  %v289_v12 = vadd.s32 %v287_v63, %v281_v58 }
  0x3e   :  { %v269_v10 = vsel %vm268_vm2, 1, %v1442_v52  ;;  %vm290_vm3 = vc.u32 %v288_v0, %v284_v59  ;;  %v263_v20 = vshrl.u32 %v258_v50, 16  ;;  %v240_v24 = vsel %vm238_vm13, %v1559_v60, 2102212464 }
  0x3f   :  { %v271_v13 = vadd.s32 %v269_v10, %v267_v26  ;;  %v291_v18 = vsel %vm290_vm3, 1, %v1442_v52  ;;  %v1610_v23 = vsub.s32 %v146_v21, %v149_v9  ;;  %v372_v30 = vand.u32 31, %v370_v15 }
  0x40   :  { %v293_v4 = vadd.s32 %v291_v18, %v289_v12  ;;  %v239_v34 = vsel %vm235_vm10, %v219_v19, %v1542_v16  ;;  %v241_v36 = vsel %vm237_vm11, %v1544_v17, %v240_v24  ;;  %v1623_v38 = vadd.s32 %v288_v0, %v284_v59 }
  0x41   :  { %v272_v22 = vadd.s32 %v271_v13, %v261_v6  ;;  %v152_v41 = vsub.s32 0, %v1610_v23  ;;  %vm151_vm4 = vcmp.lt.s32.totalorder %v1610_v23, 0  ;;  %v1627_v60 = vsub.s32 32, %v372_v30 }
  0x42   :  { %v294_v28 = vadd.s32 %v293_v4, %v283_v8  ;;  %v242_v42 = vsel %vm236_vm12, %v239_v34, %v241_v36  ;;  %v2638_v45 = vand.u32 2147483647, %v1475_v11  ;;  %v384_v21 = vshll.u32 %v2643_v35, %v372_v30 }
  0x43   :  { %v1621_v51 = vadd.s32 %v272_v22, %v263_v20  ;;  %v153_v16 = vsel %vm151_vm4, %v152_v41, %v1610_v23  ;;  %v296_v17 = vmul.u32 %v1494_v40, %v242_v42  ;;  %v385_v47 = vshrl.u32 %v2641_v37, %v1627_v60 }
  0x44   :  { %v295_v32 = vadd.s32 %v294_v28, %v285_v25  ;;  %v1639_v49 = vshrl.u32 %v370_v15, 5  ;;  %v387_v57 = vshll.u32 %v2641_v37, %v372_v30  ;;  %v388_v50 = vshrl.u32 %v2639_v46, %v1627_v60 }
  0x45   :  { %vm298_vm5 = vc.u32 %v1621_v51, %v1623_v38  ;;  %v154_v53 = vclz %v153_v16  ;;  %v375_v39 = vshll.u32 %v2649_v29, %v372_v30  ;;  %v378_v40 = vshll.u32 %v2647_v31, %v372_v30 }
  0x46   :  { %v299_v43 = vadd.s32 1, %v295_v32  ;;  %v376_v54 = vshrl.u32 %v2647_v31, %v1627_v60  ;;  %v379_v55 = vshrl.u32 %v2645_v33, %v1627_v60  ;;  %v381_v44 = vshll.u32 %v2645_v33, %v372_v30 }
  0x47   :  { %v382_v56 = vshrl.u32 %v2643_v35, %v1627_v60  ;;  %v386_v59 = vor.u32 %v385_v47, %v384_v21  ;;  %v365_v27 = vand.u32 8388607, %v2638_v45  ;;  %v389_v62 = vor.u32 %v388_v50, %v387_v57  ;;  %v43_v50 = vld [vmem:[#allocation2 + $0x18] sm:$0xff] }
  0x48   :  { %v300_v48 = vsel %vm298_vm5, %v299_v43, %v295_v32  ;;  %vm393_vm6 = vcmp.lt.s32.totalorder %v1639_v49, 4  ;;  %v1323_v63 = vadd.s32 4294967294, %v154_v53  ;;  %v1656_v0 = vor.u32 %v376_v54, %v375_v39 }
  0x49   :  { %v301_v58 = vadd.s32 %v300_v48, %v296_v17  ;;  %v1658_v6 = vor.u32 %v379_v55, %v378_v40  ;;  %v1660_v26 = vor.u32 %v382_v56, %v381_v44  ;;  %vm390_vm7 = vcmp.lt.s32.totalorder %v1639_v49, 1 }
  0x4a   :  { %vm392_vm8 = vcmp.lt.s32.totalorder %v1639_v49, 3  ;;  %v399_v9 = vsel %vm393_vm6, %v386_v59, 920167782  ;;  %v366_v10 = vor.u32 8388608, %v365_v27  ;;  %v403_v12 = vsel %vm393_vm6, %v389_v62, 1326507024 }
  0x4b   :  { %v302_v8 = vadd.s32 536870912, %v301_v58  ;;  %vm1324_vm9 = vcmp.lt.s32.totalorder %v1323_v63, 0  ;;  %vm391_vm10 = vcmp.lt.s32.totalorder %v1639_v49, 2  ;;  %v398_v13 = vsel %vm390_vm7, %v1656_v0, %v1658_v6 }
  0x4c   :  { %v400_v18 = vsel %vm392_vm8, %v1660_v26, %v399_v9  ;;  %v402_v4 = vsel %vm390_vm7, %v1658_v6, %v1660_v26  ;;  %v404_v15 = vsel %vm392_vm8, %v386_v59, %v403_v12  ;;  %v157_v19 = vsel %vm1324_vm9, 0, %v1323_v63 }
  0x4d   :  { %v1676_v25 = vshrl.u32 %v302_v8, 30  ;;  %v1684_v20 = vshll.u32 %v366_v10, 8  ;;  %v401_v22 = vsel %vm391_vm10, %v398_v13, %v400_v18  ;;  %v405_v24 = vsel %vm391_vm10, %v402_v4, %v404_v15 }
  0x4e   :  { %v162_v28 = vsub.s32 4294967266, %v157_v19  ;;  %v432_v34 = vshrl.u32 %v401_v22, 16  ;;  %v410_v36 = vshrl.u32 %v405_v24, 16  ;;  %v142_v41 = vadd.s32 %v1564_v1, %v1578_v14 }
  0x4f   :  { %v304_v30 = vshll.u32 %v1676_v25, 30  ;;  %v407_v32 = vand.u32 65535, %v1684_v20  ;;  %v158_v42 = vsub.s32 32, %v157_v19  ;;  %v408_v17 = vshrl.u32 %v1684_v20, 16 }
  0x50   :  { %v163_v43 = vadd.s32 127, %v162_v28  ;;  %v431_v21 = vand.u32 65535, %v401_v22  ;;  %v409_v48 = vand.u32 65535, %v405_v24  ;;  %v159_v53 = vshll.u32 %v1610_v23, %v157_v19 }
  0x51   :  { %v1694_v16 = vsub.s32 %v301_v58, %v304_v30  ;;  %v434_v47 = vmul.u32 %v432_v34, %v407_v32  ;;  %v412_v57 = vmul.u32 %v410_v36, %v407_v32  ;;  %v160_v39 = vshrl.u32 %v142_v41, %v158_v42 }
  0x52   :  { %v164_v40 = vshll.u32 %v163_v43, 23  ;;  %v433_v1 = vmul.u32 %v431_v21, %v407_v32  ;;  %v435_v14 = vmul.u32 %v431_v21, %v408_v17  ;;  %v1700_v44 = vmul.f32 3.1415927, %v43_v50 }
  0x53   :  { %v307_v54 = vsub.s32 0, %v1694_v16  ;;  %vm306_vm11 = vcmp.lt.s32.totalorder %v1694_v16, 0  ;;  %v437_v55 = vshll.u32 %v434_v47, 16  ;;  %v411_v56 = vmul.u32 %v409_v48, %v407_v32 }
  0x54   :  { %2671 = vst [vmem:[#allocation14_spill] sm:$0xff] %v1700_v44  ;;  %v413_v58 = vmul.u32 %v409_v48, %v408_v17  ;;  %v415_v59 = vshll.u32 %v412_v57, 16  ;;  %v161_v27 = vor.u32 %v160_v39, %v159_v53  ;;  %v165_v62 = vor.u32 4788187, %v164_v40 }
  0x55   :  { %v308_v63 = vsel %vm306_vm11, %v307_v54, %v1694_v16  ;;  %v439_v8 = vshll.u32 %v435_v14, 16  ;;  %vm441_vm12 = vc.u32 %v433_v1, %v437_v55  ;;  %v443_v23 = vadd.s32 %v437_v55, %v433_v1 }
  0x56   :  { %v417_v9 = vshll.u32 %v413_v58, 16  ;;  %vm419_vm13 = vc.u32 %v411_v56, %v415_v59  ;;  %v421_v10 = vadd.s32 %v415_v59, %v411_v56  ;;  %v516_v12 = vand.u32 2139095040, %v1700_v44 }
  0x57   :  { %v309_v13 = vclz %v308_v63  ;;  %v436_v18 = vmul.u32 %v432_v34, %v408_v17  ;;  %v166_v4 = vand.u32 2147483647, %v165_v62  ;;  %v168_v15 = vcvt.s32.f32 %v161_v27 }
  0x58   :  { %v414_v19 = vmul.u32 %v410_v36, %v408_v17  ;;  %v442_v22 = vsel %vm441_vm12, 1, %v1442_v52  ;;  %v420_v24 = vsel %vm419_vm13, 1, %v1442_v52  ;;  %vm445_vm14 = vc.u32 %v443_v23, %v439_v8 }
  0x59   :  { %vm423_vm15 = vc.u32 %v421_v10, %v417_v9  ;;  %v517_v28 = vshrl.u32 %v516_v12, 23  ;;  %v1326_v30 = vadd.s32 4294967294, %v309_v13  ;;  %v444_v32 = vadd.s32 %v442_v22, %v436_v18 }
  0x5a   :  { %v169_v41 = vmul.f32 %v168_v15, %v166_v4  ;;  %v422_v42 = vadd.s32 %v420_v24, %v414_v19  ;;  %v446_v43 = vsel %vm445_vm14, 1, %v1442_v52  ;;  %v424_v21 = vsel %vm423_vm15, 1, %v1442_v52  ;;  %v668_v15 = vld [vmem:[#allocation5] sm:$0xff] }
  0x5b   :  { %v1331_v48 = vadd.s32 4294967169, %v517_v28  ;;  %vm1327_vm0 = vcmp.lt.s32.totalorder %v1326_v30, 0  ;;  %v438_v34 = vshrl.u32 %v434_v47, 16  ;;  %v448_v50 = vadd.s32 %v446_v43, %v444_v32 }
  0x5c   :  { %v170_v36 = vxor.u32 2147483648, %v169_v41  ;;  %v416_v17 = vshrl.u32 %v412_v57, 16  ;;  %v426_v53 = vadd.s32 %v424_v21, %v422_v42  ;;  %vm50_vm1 = vcmp.lt.s32.totalorder %v1465_v2, 0 }
  0x5d   :  { %v312_v39 = vsel %vm1327_vm0, 0, %v1326_v30  ;;  %v523_v40 = vadd.s32 1, %v1331_v48  ;;  %vm1711_vm2 = vcmp.le.f32.partialorder %v48_v5, 0.7853982  ;;  %v440_v1 = vshrl.u32 %v435_v14, 16 }
  0x5e   :  { %v449_v55 = vadd.s32 %v448_v50, %v438_v34  ;;  %v171_v56 = vsel %vm50_vm1, %v170_v36, %v169_v41  ;;  %v374_v47 = vshrl.u32 %v2649_v29, %v1627_v60  ;;  %v418_v57 = vshrl.u32 %v413_v58, 16 }
  0x5f   :  { %v427_v59 = vadd.s32 %v426_v53, %v416_v17  ;;  %v317_v27 = vsub.s32 4294967266, %v312_v39  ;;  %v395_v62 = vsel %vm393_vm6, %v1660_v26, 2102212464  ;;  %vm524_vm3 = vcmp.gt.s32.totalorder %v523_v40, 0 }
  0x60   :  { %v1725_v5 = vsel %vm1711_vm2, %v1465_v2, %v171_v56  ;;  %v450_v14 = vadd.s32 %v449_v55, %v440_v1  ;;  %v394_v63 = vsel %vm390_vm7, %v374_v47, %v1656_v0  ;;  %v396_v60 = vsel %vm392_vm8, %v1658_v6, %v395_v62 }
  0x61   :  { %v1733_v58 = vadd.s32 %v427_v59, %v418_v57  ;;  %v1735_v9 = vadd.s32 %v443_v23, %v439_v8  ;;  %v297_v26 = vadd.s32 %v1623_v38, %v1621_v51  ;;  %v313_v10 = vsub.s32 32, %v312_v39 }
  0x62   :  { %v318_v12 = vadd.s32 127, %v317_v27  ;;  %v525_v13 = vsel %vm524_vm3, %v523_v40, 0  ;;  %v1741_v18 = vmul.f32 %v1725_v5, %v1725_v5  ;;  %v397_v0 = vsel %vm391_vm10, %v394_v63, %v396_v60 }
  0x63   :  { %v454_v4 = vadd.s32 1, %v450_v14  ;;  %vm453_vm4 = vc.u32 %v1733_v58, %v1735_v9  ;;  %v527_v8 = vand.u32 31, %v525_v13  ;;  %v314_v51 = vshll.u32 %v1694_v16, %v312_v39 }
  0x64   :  { %v177_v6 = vmul.f32 -0.001358992, %v1741_v18  ;;  %v315_v38 = vshrl.u32 %v297_v26, %v313_v10  ;;  %v319_v23 = vshll.u32 %v318_v12, 23  ;;  %v451_v19 = vmul.u32 %v1684_v20, %v397_v0 }
  0x65   :  { %v1750_v22 = vmul.f32 3.1415927, %v668_v15  ;;  %v172_v24 = vsub.s32 4, %v1601_v61  ;;  %v455_v49 = vsel %vm453_vm4, %v454_v4, %v450_v14  ;;  %v184_v30 = vmul.f32 -0.00019511016, %v1741_v18 }
  0x66   :  { %v178_v28 = vadd.f32 0.041655596, %v177_v6  ;;  %v1754_v32 = vsub.s32 32, %v527_v8  ;;  %v316_v41 = vor.u32 %v315_v38, %v314_v51  ;;  %v320_v42 = vor.u32 4788187, %v319_v23 }
  0x67   :  { %2674 = vst [vmem:[#allocation15_spill] sm:$0xff] %v1750_v22  ;;  %v456_v43 = vadd.s32 %v455_v49, %v451_v19  ;;  %v679_v21 = vand.u32 2139095040, %v1750_v22  ;;  %v173_v16 = vsel %vm50_vm1, %v172_v24, %v1601_v61  ;;  %v185_v48 = vadd.f32 0.008332121, %v184_v30 }
  0x68   :  { %v179_v20 = vmul.f32 %v178_v28, %v1741_v18  ;;  %vm205_vm5 = vcmp.lt.s32.totalorder %v1467_v3, 0  ;;  %v542_v34 = vshll.u32 %v2641_v37, %v527_v8  ;;  %v543_v50 = vshrl.u32 %v2639_v46, %v1754_v32 }
  0x69   :  { %v321_v36 = vand.u32 2147483647, %v320_v42  ;;  %v323_v17 = vcvt.s32.f32 %v316_v41  ;;  %v2636_v53 = vand.u32 2147483647, %v1700_v44  ;;  %v1766_v39 = vshrl.u32 %v525_v13, 5 }
  0x6a   :  { %v457_v40 = vadd.s32 536870912, %v456_v43  ;;  %v533_v1 = vshll.u32 %v2647_v31, %v527_v8  ;;  %v536_v61 = vshll.u32 %v2645_v33, %v527_v8  ;;  %v680_v55 = vshrl.u32 %v679_v21, 23 }
  0x6b   :  { %v534_v56 = vshrl.u32 %v2645_v33, %v1754_v32  ;;  %v537_v47 = vshrl.u32 %v2643_v35, %v1754_v32  ;;  %v539_v57 = vshll.u32 %v2643_v35, %v527_v8  ;;  %v540_v59 = vshrl.u32 %v2641_v37, %v1754_v32 }
  0x6c   :  { %v175_v27 = vsel %vm1711_vm2, 0, %v173_v16  ;;  %v186_v62 = vmul.f32 %v185_v48, %v1741_v18  ;;  %vm1782_vm6 = vcmp.le.f32.partialorder %v203_v7, 0.7853982  ;;  %v544_v63 = vor.u32 %v543_v50, %v542_v34 }
  0x6d   :  { %v324_v60 = vmul.f32 %v323_v17, %v321_v36  ;;  %v327_v26 = vsub.s32 4, %v1676_v25  ;;  %v520_v10 = vand.u32 8388607, %v2636_v53  ;;  %vm548_vm7 = vcmp.lt.s32.totalorder %v1766_v39, 4 }
  0x6e   :  { %v180_v12 = vadd.f32 -0.4999988, %v179_v20  ;;  %v1790_v54 = vshrl.u32 %v457_v40, 30  ;;  %v530_v13 = vshll.u32 %v2649_v29, %v527_v8  ;;  %v531_v7 = vshrl.u32 %v2647_v31, %v1754_v32 }
  0x6f   :  { %v1795_v0 = vor.u32 %v534_v56, %v533_v1  ;;  %v1797_v4 = vor.u32 %v537_v47, %v536_v61  ;;  %v541_v15 = vor.u32 %v540_v59, %v539_v57  ;;  %v1334_v6 = vadd.s32 4294967169, %v680_v55 }
  0x70   :  { %v187_v51 = vadd.f32 -0.16666654, %v186_v62  ;;  %vm545_vm8 = vcmp.lt.s32.totalorder %v1766_v39, 1  ;;  %vm547_vm9 = vcmp.lt.s32.totalorder %v1766_v39, 3  ;;  %v558_v38 = vsel %vm548_vm7, %v544_v63, 1326507024 }
  0x71   :  { %v325_v23 = vxor.u32 2147483648, %v324_v60  ;;  %v328_v8 = vsel %vm205_vm5, %v327_v26, %v1676_v25  ;;  %v521_v19 = vor.u32 8388608, %v520_v10  ;;  %v686_v24 = vadd.s32 1, %v1334_v6 }
  0x72   :  { %v192_v49 = vadd.s32 3, %v175_v27  ;;  %v459_v28 = vshll.u32 %v1790_v54, 30  ;;  %v1807_v30 = vor.u32 %v531_v7, %v530_v13  ;;  %vm546_vm10 = vcmp.lt.s32.totalorder %v1766_v39, 2 }
  0x73   :  { %v554_v41 = vsel %vm548_vm7, %v541_v15, 920167782  ;;  %v557_v42 = vsel %vm545_vm8, %v1795_v0, %v1797_v4  ;;  %v559_v25 = vsel %vm547_vm9, %v541_v15, %v558_v38  ;;  %vm687_vm11 = vcmp.gt.s32.totalorder %v686_v24, 0 }
  0x74   :  { %v181_v21 = vmul.f32 %v180_v12, %v1741_v18  ;;  %v188_v16 = vmul.f32 %v187_v51, %v1741_v18  ;;  %v330_v20 = vsel %vm1782_vm6, 0, %v328_v8  ;;  %v688_v48 = vsel %vm687_vm11, %v686_v24, 0 }
  0x75   :  { %v326_v34 = vsel %vm205_vm5, %v325_v23, %v324_v60  ;;  %v1824_v50 = vshll.u32 %v521_v19, 8  ;;  %v2637_v36 = vand.u32 2147483647, %v1750_v22  ;;  %v690_v17 = vand.u32 31, %v688_v48 }
  0x76   :  { %v1827_v40 = vsub.s32 %v456_v43, %v459_v28  ;;  %v553_v1 = vsel %vm545_vm8, %v1807_v30, %v1795_v0  ;;  %v555_v18 = vsel %vm547_vm9, %v1797_v4, %v554_v41  ;;  %v560_v61 = vsel %vm546_vm10, %v557_v42, %v559_v25  ;;  %v669_v42 = vld [vmem:[#allocation5 + $0x8] sm:$0xff] }
  0x77   :  { %v1838_v55 = vand.u32 3, %v192_v49  ;;  %v1840_v56 = vadd.s32 3, %v330_v20  ;;  %v1842_v47 = vadd.f32 1.0, %v181_v21  ;;  %v1844_v43 = vadd.f32 1.0, %v188_v16 }
  0x78   :  { %v1848_v57 = vadd.s32 %v1735_v9, %v1733_v58  ;;  %v1850_v59 = vsub.s32 32, %v690_v17  ;;  %v1855_v27 = vsel %vm1782_vm6, %v1467_v3, %v326_v34  ;;  %v1859_v62 = vsel %vm546_vm10, %v553_v1, %v555_v18 }
  0x79   :  { %v562_v63 = vand.u32 65535, %v1824_v50  ;;  %v565_v60 = vshrl.u32 %v560_v61, 16  ;;  %vm461_vm12 = vcmp.lt.s32.totalorder %v1827_v40, 0  ;;  %v462_v26 = vsub.s32 0, %v1827_v40 }
  0x7a   :  { %v683_v58 = vand.u32 8388607, %v2637_v36  ;;  %v693_v9 = vshll.u32 %v2649_v29, %v690_v17  ;;  %v694_v14 = vshrl.u32 %v2647_v31, %v1850_v59  ;;  %v696_v10 = vshll.u32 %v2647_v31, %v690_v17 }
  0x7b   :  { %v697_v12 = vshrl.u32 %v2645_v33, %v1850_v59  ;;  %v702_v13 = vshll.u32 %v2643_v35, %v690_v17  ;;  %v587_v7 = vshrl.u32 %v1859_v62, 16  ;;  %v1874_v15 = vshrl.u32 %v688_v48, 5 }
  0x7c   :  { %v699_v6 = vshll.u32 %v2645_v33, %v690_v17  ;;  %v700_v51 = vshrl.u32 %v2643_v35, %v1850_v59  ;;  %v563_v38 = vshrl.u32 %v1824_v50, 16  ;;  %v564_v23 = vand.u32 65535, %v560_v61 }
  0x7d   :  { %v1880_v8 = vmul.u32 %v565_v60, %v562_v63  ;;  %v703_v19 = vshrl.u32 %v2641_v37, %v1850_v59  ;;  %v463_v24 = vsel %vm461_vm12, %v462_v26, %v1827_v40  ;;  %v586_v49 = vand.u32 65535, %v1859_v62 }
  0x7e   :  { %v705_v28 = vshll.u32 %v2641_v37, %v690_v17  ;;  %v706_v41 = vshrl.u32 %v2639_v46, %v1850_v59  ;;  %v684_v25 = vor.u32 8388608, %v683_v58  ;;  %v1891_v21 = vor.u32 %v694_v14, %v693_v9 }
  0x7f   :  { %v1893_v16 = vor.u32 %v697_v12, %v696_v10  ;;  %v704_v20 = vor.u32 %v703_v19, %v702_v13  ;;  %v1895_v48 = vmul.u32 %v587_v7, %v562_v63  ;;  %v1897_v34 = vor.u32 %v700_v51, %v699_v6 }
  0x80   :  { %vm708_vm13 = vcmp.lt.s32.totalorder %v1874_v15, 1  ;;  %vm711_vm14 = vcmp.lt.s32.totalorder %v1874_v15, 4  ;;  %v464_v1 = vclz %v463_v24  ;;  %v566_v17 = vmul.u32 %v564_v23, %v562_v63 }
  0x81   :  { %v570_v18 = vshll.u32 %v1880_v8, 16  ;;  %vm710_vm15 = vcmp.lt.s32.totalorder %v1874_v15, 3  ;;  %v1903_v61 = vmul.u32 %v564_v23, %v563_v38  ;;  %v1905_v62 = vmul.f32 3.1415927, %v669_v42 }
  0x82   :  { %v707_v26 = vor.u32 %v706_v41, %v705_v28  ;;  %v717_v58 = vsel %vm711_vm14, %v704_v20, 920167782  ;;  %v1909_v9 = vmul.u32 %v586_v49, %v563_v38  ;;  %vm709_vm0 = vcmp.lt.s32.totalorder %v1874_v15, 2 }
  0x83   :  { %v716_v14 = vsel %vm708_vm13, %v1891_v21, %v1893_v16  ;;  %v1916_v10 = vshll.u32 %v684_v25, 8  ;;  %v1920_v12 = vmul.f32 %v1855_v27, %v1855_v27  ;;  %v588_v13 = vmul.u32 %v586_v49, %v562_v63 }
  0x84   :  { %v592_v6 = vshll.u32 %v1895_v48, 16  ;;  %v718_v51 = vsel %vm710_vm15, %v1897_v34, %v717_v58  ;;  %v1926_v23 = vadd.s32 4294967294, %v464_v1  ;;  %v569_v19 = vmul.u32 %v565_v60, %v563_v38 }
  0x85   :  { %vm574_vm1 = vc.u32 %v566_v17, %v570_v18  ;;  %v720_v24 = vsel %vm708_vm13, %v1893_v16, %v1897_v34  ;;  %v572_v28 = vshll.u32 %v1903_v61, 16  ;;  %v576_v41 = vadd.s32 %v570_v18, %v566_v17 }
  0x86   :  { %v719_v63 = vsel %vm709_vm0, %v716_v14, %v718_v51  ;;  %v721_v49 = vsel %vm711_vm14, %v707_v26, 1326507024  ;;  %v2653_v42 = vshll.u32 %v1909_v9, 16  ;;  %v725_v25 = vand.u32 65535, %v1916_v10 }
  0x87   :  { %v722_v60 = vsel %vm710_vm15, %v704_v20, %v721_v49  ;;  %v726_v1 = vshrl.u32 %v1916_v10, 16  ;;  %v575_v58 = vsel %vm574_vm1, 1, %v1442_v52  ;;  %vm1943_vm2 = vc.u32 %v588_v13, %v592_v6 }
  0x88   :  { %v723_v17 = vsel %vm709_vm0, %v720_v24, %v722_v60  ;;  %v750_v18 = vshrl.u32 %v719_v63, 16  ;;  %v1949_v26 = vadd.s32 %v592_v6, %v588_v13  ;;  %v749_v36 = vand.u32 65535, %v719_v63 }
  0x89   :  { %v727_v14 = vand.u32 65535, %v723_v17  ;;  %v728_v51 = vshrl.u32 %v723_v17, 16  ;;  %v1952_v20 = vmul.f32 -0.001358992, %v1920_v12  ;;  %v1956_v49 = vshrl.u32 %v2649_v29, %v1754_v32 }
  0x8a   :  { %vm578_vm3 = vc.u32 %v576_v41, %v572_v28  ;;  %v834_v45 = vand.u32 2139095040, %v1905_v62  ;;  %v591_v46 = vmul.u32 %v587_v7, %v563_v38  ;;  %v752_v24 = vmul.u32 %v750_v18, %v725_v25 }
  0x8b   :  { %v730_v37 = vmul.u32 %v728_v51, %v725_v25  ;;  %v731_v35 = vmul.u32 %v727_v14, %v726_v1  ;;  %vm1330_vm4 = vcmp.lt.s32.totalorder %v1926_v23, 0  ;;  %v577_v13 = vadd.s32 %v575_v58, %v569_v19 }
  0x8c   :  { %v597_v6 = vsel %vm1943_vm2, 1, %v1442_v52  ;;  %v729_v63 = vmul.u32 %v727_v14, %v725_v25  ;;  %v579_v60 = vsel %vm578_vm3, 1, %v1442_v52  ;;  %vm600_vm5 = vc.u32 %v1949_v26, %v2653_v42 }
  0x8d   :  { %v733_v32 = vshll.u32 %v730_v37, 16  ;;  %v753_v28 = vmul.u32 %v749_v36, %v726_v1  ;;  %v571_v7 = vshrl.u32 %v1880_v8, 16  ;;  %v732_v38 = vmul.u32 %v728_v51, %v726_v1 }
  0x8e   :  { %v735_v41 = vshll.u32 %v731_v35, 16  ;;  %v835_v17 = vshrl.u32 %v834_v45, 23  ;;  %v593_v19 = vshrl.u32 %v1895_v48, 16  ;;  %v599_v58 = vadd.s32 %v597_v6, %v591_v46 }
  0x8f   :  { %v751_v33 = vmul.u32 %v749_v36, %v725_v25  ;;  %v755_v53 = vshll.u32 %v752_v24, 16  ;;  %v581_v31 = vadd.s32 %v579_v60, %v577_v13  ;;  %v601_v14 = vsel %vm600_vm5, 1, %v1442_v52 }
  0x90   :  { %vm737_vm6 = vc.u32 %v729_v63, %v733_v32  ;;  %v739_v29 = vadd.s32 %v733_v32, %v729_v63  ;;  %v2679_v3 = vmov 683565275   ;;  %v754_v44 = vmul.u32 %v750_v18, %v726_v1 }
  0x91   :  { %v692_v42 = vshrl.u32 %v2679_v3, %v1850_v59  ;;  %v738_v2 = vsel %vm737_vm6, 1, %v1442_v52  ;;  %v757_v8 = vshll.u32 %v753_v28, 16  ;;  %v734_v51 = vshrl.u32 %v730_v37, 16 }
  0x92   :  { %v740_v22 = vadd.s32 %v738_v2, %v732_v38  ;;  %vm741_vm11 = vc.u32 %v739_v29, %v735_v41  ;;  %v1337_v45 = vadd.s32 4294967169, %v835_v17  ;;  %v713_v46 = vsel %vm711_vm14, %v1897_v34, 2102212464 }
  0x93   :  { %v742_v36 = vsel %vm741_vm11, 1, %v1442_v52  ;;  %vm759_vm12 = vc.u32 %v751_v33, %v755_v53  ;;  %v761_v48 = vadd.s32 %v755_v53, %v751_v33  ;;  %v603_v25 = vadd.s32 %v601_v14, %v599_v58 }
  0x94   :  { %v736_v13 = vshrl.u32 %v731_v35, 16  ;;  %v744_v6 = vadd.s32 %v742_v36, %v740_v22  ;;  %v760_v59 = vsel %vm759_vm12, 1, %v1442_v52  ;;  %v712_v37 = vsel %vm708_vm13, %v692_v42, %v1891_v21 }
  0x95   :  { %v756_v2 = vshrl.u32 %v752_v24, 16  ;;  %v762_v29 = vadd.s32 %v760_v59, %v754_v44  ;;  %vm763_vm1 = vc.u32 %v761_v48, %v757_v8  ;;  %v714_v34 = vsel %vm710_vm15, %v1893_v16, %v713_v46  ;;  %v670_v24 = vld [vmem:[#allocation5 + $0x10] sm:$0xff] }
  0x96   :  { %v745_v1 = vadd.s32 %v744_v6, %v734_v51  ;;  %v764_v18 = vsel %vm763_vm1, 1, %v1442_v52  ;;  %v841_v33 = vadd.s32 1, %v1337_v45  ;;  %v1988_v35 = vsel %vm1330_vm4, 0, %v1926_v23 }
  0x97   :  { %v550_v22 = vsel %vm548_vm7, %v1797_v4, 2102212464  ;;  %v758_v21 = vshrl.u32 %v753_v28, 16  ;;  %v766_v44 = vadd.s32 %v764_v18, %v762_v29  ;;  %v573_v42 = vshrl.u32 %v1903_v61, 16 }
  0x98   :  { %v1994_v63 = vadd.s32 %v745_v1, %v736_v13  ;;  %v1996_v16 = vadd.s32 %v761_v48, %v757_v8  ;;  %vm842_vm13 = vcmp.gt.s32.totalorder %v841_v33, 0  ;;  %v582_v60 = vadd.s32 %v581_v31, %v571_v7 }
  0x99   :  { %v715_v32 = vsel %vm709_vm0, %v712_v37, %v714_v34  ;;  %v767_v23 = vadd.s32 %v766_v44, %v756_v2  ;;  %v843_v38 = vsel %vm842_vm13, %v841_v33, 0  ;;  %v339_v41 = vmul.f32 -0.00019511016, %v1920_v12 }
  0x9a   :  { %v595_v4 = vshrl.u32 %v1909_v9, 16  ;;  %v604_v28 = vadd.s32 %v603_v25, %v593_v19  ;;  %v2661_v17 = vand.u32 2147483647, %v1905_v62  ;;  %v549_v61 = vsel %vm545_vm8, %v1956_v49, %v1807_v30 }
  0x9b   :  { %v2007_v58 = vmul.f32 3.1415927, %v670_v24  ;;  %v768_v31 = vadd.s32 %v767_v23, %v758_v21  ;;  %v845_v7 = vand.u32 31, %v843_v38  ;;  %v472_v15 = vsub.s32 4294967266, %v1988_v35 }
  0x9c   :  { %v551_v53 = vsel %vm547_vm9, %v1795_v0, %v550_v22  ;;  %v769_v14 = vmul.u32 %v1916_v10, %v715_v32  ;;  %vm771_vm7 = vc.u32 %v1994_v63, %v1996_v16  ;;  %v2016_v19 = vadd.s32 %v582_v60, %v573_v42 }
  0x9d   :  { %v2680_v8 = vshll.u32 %v1909_v9, 16  ;;  %v772_v49 = vadd.s32 1, %v768_v31  ;;  %v2023_v51 = vsub.s32 32, %v845_v7  ;;  %v333_v45 = vadd.f32 0.041655596, %v1952_v20 }
  0x9e   :  { %v340_v46 = vadd.f32 0.008332121, %v339_v41  ;;  %v605_v36 = vadd.s32 %v604_v28, %v595_v4  ;;  %v838_v0 = vand.u32 8388607, %v2661_v17  ;;  %v468_v10 = vsub.s32 32, %v1988_v35 }
  0x9f   :  { %v2021_v30 = vadd.s32 %v1949_v26, %v2680_v8  ;;  %v552_v48 = vsel %vm546_vm10, %v549_v61, %v551_v53  ;;  %v773_v25 = vsel %vm771_vm7, %v772_v49, %v768_v31  ;;  %v2031_v9 = vshrl.u32 %v843_v38, 5 }
  0xa0   :  { %v774_v26 = vadd.s32 %v773_v25, %v769_v14  ;;  %v2681_v13 = vmov 2475754826   ;;  %v2682_v59 = vmov 2131351028   ;;  %v473_v2 = vadd.s32 127, %v472_v15 }
  0xa1   :  { %v851_v6 = vshll.u32 %v2681_v13, %v845_v7  ;;  %v852_v37 = vshrl.u32 %v2682_v59, %v2023_v51  ;;  %v854_v20 = vshll.u32 %v2682_v59, %v845_v7  ;;  %vm608_vm8 = vc.u32 %v2016_v19, %v2021_v30 }
  0xa2   :  { %v2683_v29 = vmov 2102212464   ;;  %v609_v1 = vadd.s32 1, %v605_v36  ;;  %v775_v18 = vadd.s32 536870912, %v774_v26  ;;  %v839_v33 = vor.u32 8388608, %v838_v0 }
  0xa3   :  { %v855_v34 = vshrl.u32 %v2683_v29, %v2023_v51  ;;  %v857_v39 = vshll.u32 %v2683_v29, %v845_v7  ;;  %v2684_v22 = vmov 920167782   ;;  %vm198_vm9 = vcmp.eq.s32.totalorder %v1838_v55, 2 }
  0xa4   :  { %v858_v21 = vshrl.u32 %v2684_v22, %v2023_v51  ;;  %v848_v44 = vshll.u32 %v2679_v3, %v845_v7  ;;  %v849_v42 = vshrl.u32 %v2681_v13, %v2023_v51  ;;  %v860_v24 = vshll.u32 %v2684_v22, %v845_v7 }
  0xa5   :  { %v2685_v60 = vmov 1326507024   ;;  %v2051_v23 = vshrl.u32 %v775_v18, 30  ;;  %v2053_v38 = vor.u32 %v852_v37, %v851_v6  ;;  %v2055_v41 = vor.u32 %v855_v34, %v854_v20 }
  0xa6   :  { %v861_v32 = vshrl.u32 %v2685_v60, %v2023_v51  ;;  %vm866_vm10 = vcmp.lt.s32.totalorder %v2031_v9, 4  ;;  %v606_v4 = vmul.u32 %v1824_v50, %v552_v48  ;;  %v859_v28 = vor.u32 %v858_v21, %v857_v39 }
  0xa7   :  { %vm863_vm14 = vcmp.lt.s32.totalorder %v2031_v9, 1  ;;  %v469_v31 = vshll.u32 %v1827_v40, %v1988_v35  ;;  %v470_v7 = vshrl.u32 %v1848_v57, %v468_v10  ;;  %v610_v15 = vsel %vm608_vm8, %v609_v1, %v605_v36 }
  0xa8   :  { %v862_v61 = vor.u32 %v861_v32, %v860_v24  ;;  %vm865_vm15 = vcmp.lt.s32.totalorder %v2031_v9, 3  ;;  %v190_v53 = vmul.f32 %v1844_v43, %v1725_v5  ;;  %v474_v14 = vshll.u32 %v473_v2, 23  ;;  %v671_v24 = vld [vmem:[#allocation5 + $0x18] sm:$0xff] }
  0xa9   :  { %v2071_v8 = vshll.u32 %v839_v33, 8  ;;  %v777_v49 = vshll.u32 %v2051_v23, 30  ;;  %v2074_v40 = vor.u32 %v849_v42, %v848_v44  ;;  %vm864_vm0 = vcmp.lt.s32.totalorder %v2031_v9, 2 }
  0xaa   :  { %v876_v50 = vsel %vm866_vm10, %v862_v61, 1326507024  ;;  %v875_v57 = vsel %vm863_vm14, %v2053_v38, %v2055_v41  ;;  %v199_v35 = vxor.u32 2147483648, %v1842_v47  ;;  %v2082_v5 = vadd.s32 %v610_v15, %v606_v4 }
  0xab   :  { %v872_v43 = vsel %vm866_vm10, %v859_v28, 920167782  ;;  %v877_v36 = vsel %vm865_vm15, %v859_v28, %v876_v50  ;;  %v334_v0 = vmul.f32 %v333_v45, %v1920_v12  ;;  %v341_v10 = vmul.f32 %v340_v46, %v1920_v12 }
  0xac   :  { %v471_v48 = vor.u32 %v470_v7, %v469_v31  ;;  %v989_v25 = vand.u32 2139095040, %v2007_v58  ;;  %v475_v6 = vor.u32 4788187, %v474_v14  ;;  %v878_v37 = vsel %vm864_vm0, %v875_v57, %v877_v36 }
  0xad   :  { %v880_v20 = vand.u32 65535, %v2071_v8  ;;  %v881_v2 = vshrl.u32 %v2071_v8, 16  ;;  %v2095_v34 = vsub.s32 %v774_v26, %v777_v49  ;;  %v871_v45 = vsel %vm863_vm14, %v2074_v40, %v2053_v38 }
  0xae   :  { %v873_v46 = vsel %vm865_vm15, %v2055_v41, %v872_v43  ;;  %v882_v39 = vand.u32 65535, %v878_v37  ;;  %vm195_vm2 = vcmp.eq.s32.totalorder %v1838_v55, 0  ;;  %v2106_v1 = vand.u32 3, %v1840_v56 }
  0xaf   :  { %v612_v18 = vadd.s32 536870912, %v2082_v5  ;;  %v883_v33 = vshrl.u32 %v878_v37, 16  ;;  %v196_v26 = vxor.u32 2147483648, %v190_v53  ;;  %v2111_v21 = vsel %vm198_vm9, %v199_v35, %v190_v53 }
  0xb0   :  { %v335_v44 = vadd.f32 -0.4999988, %v334_v0  ;;  %v990_v42 = vshrl.u32 %v989_v25, 23  ;;  %v874_v32 = vsel %vm864_vm0, %v871_v45, %v873_v46  ;;  %v884_v4 = vmul.u32 %v882_v39, %v880_v20 }
  0xb1   :  { %v885_v28 = vmul.u32 %v883_v33, %v880_v20  ;;  %v2115_v61 = vmul.u32 %v882_v39, %v881_v2  ;;  %v342_v56 = vadd.f32 -0.16666654, %v341_v10  ;;  %v476_v31 = vand.u32 2147483647, %v475_v6 }
  0xb2   :  { %v478_v7 = vcvt.s32.f32 %v471_v48  ;;  %v780_v15 = vsub.s32 0, %v2095_v34  ;;  %v2118_v14 = vshrl.u32 %v612_v18, 30  ;;  %vm779_vm3 = vcmp.lt.s32.totalorder %v2095_v34, 0 }
  0xb3   :  { %v887_v53 = vmul.u32 %v883_v33, %v881_v2  ;;  %v888_v50 = vshll.u32 %v885_v28, 16  ;;  %v2124_v49 = vsel %vm195_vm2, %v1842_v47, %v196_v26  ;;  %v2126_v57 = vmul.f32 3.1415927, %v671_v24 }
  0xb4   :  { %2686 = vst [vmem:[#allocation16_spill] sm:$0xff] %v2118_v14  ;;  %v904_v35 = vand.u32 65535, %v874_v32  ;;  %v905_v43 = vshrl.u32 %v874_v32, 16  ;;  %v2129_v36 = vmul.f32 %v335_v44, %v1920_v12  ;;  %v890_v0 = vshll.u32 %v2115_v61, 16 }
  0xb5   :  { %vm892_vm4 = vc.u32 %v884_v4, %v888_v50  ;;  %v1340_v10 = vadd.s32 4294967169, %v990_v42  ;;  %v2133_v48 = vmul.f32 %v342_v56, %v1920_v12  ;;  %v2135_v25 = vmul.f32 %v478_v7, %v476_v31 }
  0xb6   :  { %v781_v6 = vsel %vm779_vm3, %v780_v15, %v2095_v34  ;;  %v893_v47 = vsel %vm892_vm4, 1, %v1442_v52  ;;  %v614_v37 = vshll.u32 %v2118_v14, 30  ;;  %v847_v45 = vshrl.u32 %v2679_v3, %v2023_v51 }
  0xb7   :  { %v894_v46 = vadd.s32 %v888_v50, %v884_v4  ;;  %v895_v39 = vadd.s32 %v893_v47, %v887_v53  ;;  %v868_v18 = vsel %vm866_vm10, %v2055_v41, 2102212464  ;;  %v906_v33 = vmul.u32 %v904_v35, %v880_v20 }
  0xb8   :  { %v907_v12 = vmul.u32 %v905_v43, %v880_v20  ;;  %v908_v26 = vmul.u32 %v904_v35, %v881_v2  ;;  %v782_v44 = vclz %v781_v6  ;;  %v889_v42 = vshrl.u32 %v885_v28, 16 }
  0xb9   :  { %vm896_vm5 = vc.u32 %v894_v46, %v890_v0  ;;  %v996_v24 = vadd.s32 1, %v1340_v10  ;;  %v909_v56 = vmul.u32 %v905_v43, %v881_v2  ;;  %v2147_v51 = vsub.s32 %v2082_v5, %v614_v37 }
  0xba   :  { %v897_v32 = vsel %vm896_vm5, 1, %v1442_v52  ;;  %v910_v31 = vshll.u32 %v907_v12, 16  ;;  %v912_v7 = vshll.u32 %v908_v26, 16  ;;  %v867_v4 = vsel %vm863_vm14, %v847_v45, %v2074_v40 }
  0xbb   :  { %v899_v41 = vadd.s32 %v897_v32, %v895_v39  ;;  %v2660_v20 = vand.u32 2147483647, %v2007_v58  ;;  %v869_v28 = vsel %vm865_vm15, %v2053_v38, %v868_v18  ;;  %vm997_vm11 = vcmp.gt.s32.totalorder %v996_v24, 0 }
  0xbc   :  { %vm914_vm6 = vc.u32 %v906_v33, %v910_v31  ;;  %v916_v15 = vadd.s32 %v910_v31, %v906_v33  ;;  %v891_v2 = vshrl.u32 %v2115_v61, 16  ;;  %v998_v50 = vsel %vm997_vm11, %v996_v24, 0 }
  0xbd   :  { %v900_v53 = vadd.s32 %v899_v41, %v889_v42  ;;  %v915_v5 = vsel %vm914_vm6, 1, %v1442_v52  ;;  %v1335_v35 = vadd.s32 4294967294, %v782_v44  ;;  %v911_v43 = vshrl.u32 %v907_v12, 16 }
  0xbe   :  { %v917_v0 = vadd.s32 %v915_v5, %v909_v56  ;;  %vm918_vm12 = vc.u32 %v916_v15, %v912_v7  ;;  %vm360_vm1 = vcmp.lt.s32.totalorder %v1475_v11, 0  ;;  %v480_v40 = vxor.u32 2147483648, %v2135_v25 }
  0xbf   :  { %v482_v10 = vsub.s32 4, %v1790_v54  ;;  %v919_v38 = vsel %vm918_vm12, 1, %v1442_v52  ;;  %v1000_v6 = vand.u32 31, %v998_v50  ;;  %vm616_vm13 = vcmp.lt.s32.totalorder %v2147_v51, 0 }
  0xc0   :  { %v617_v61 = vsub.s32 0, %v2147_v51  ;;  %v913_v47 = vshrl.u32 %v908_v26, 16  ;;  %v921_v37 = vadd.s32 %v919_v38, %v917_v0  ;;  %v870_v45 = vsel %vm864_vm0, %v867_v4, %v869_v28 }
  0xc1   :  { %v2166_v46 = vadd.s32 %v900_v53, %v891_v2  ;;  %v2168_v39 = vadd.s32 %v916_v15, %v912_v7  ;;  %v2170_v18 = vsub.s32 32, %v1000_v6  ;;  %vm1336_vm7 = vcmp.lt.s32.totalorder %v1335_v35, 0 }
  0xc2   :  { %v922_v33 = vadd.s32 %v921_v37, %v911_v43  ;;  %v993_v12 = vand.u32 8388607, %v2660_v20  ;;  %v2174_v44 = vshrl.u32 %v998_v50, 5  ;;  %v1003_v42 = vshll.u32 %v2679_v3, %v1000_v6 }
  0xc3   :  { %v1004_v26 = vshrl.u32 %v2681_v13, %v2170_v18  ;;  %v1006_v9 = vshll.u32 %v2681_v13, %v1000_v6  ;;  %v1007_v24 = vshrl.u32 %v2682_v59, %v2170_v18  ;;  %v2687_v32 = vand.u32 2147483647, %v1475_v11 }
  0xc4   :  { %v923_v31 = vadd.s32 %v922_v33, %v913_v47  ;;  %v1009_v7 = vshll.u32 %v2682_v59, %v1000_v6  ;;  %v1010_v4 = vshrl.u32 %v2683_v29, %v2170_v18  ;;  %v1012_v41 = vshll.u32 %v2683_v29, %v1000_v6 }
  0xc5   :  { %vm2184_vm8 = vcmp.le.f32.partialorder %v2687_v32, 0.7853982  ;;  %v2192_v28 = vsel %vm1336_vm7, 0, %v1335_v35  ;;  %v924_v15 = vmul.u32 %v2071_v8, %v870_v45  ;;  %vm926_vm9 = vc.u32 %v2166_v46, %v2168_v39 }
  0xc6   :  { %v1013_v2 = vshrl.u32 %v2684_v22, %v2170_v18  ;;  %v927_v53 = vadd.s32 1, %v923_v31  ;;  %v994_v5 = vor.u32 8388608, %v993_v12  ;;  %v1015_v50 = vshll.u32 %v2684_v22, %v1000_v6 }
  0xc7   :  { %v1016_v43 = vshrl.u32 %v2685_v60, %v2170_v18  ;;  %vm353_vm10 = vcmp.eq.s32.totalorder %v2106_v1, 2  ;;  %v2203_v0 = vor.u32 %v1004_v26, %v1003_v42  ;;  %v2205_v35 = vor.u32 %v1007_v24, %v1006_v9 }
  0xc8   :  { %v1014_v8 = vor.u32 %v1013_v2, %v1012_v41  ;;  %vm1021_vm14 = vcmp.lt.s32.totalorder %v2174_v44, 4  ;;  %v928_v38 = vsel %vm926_vm9, %v927_v53, %v923_v31  ;;  %v2208_v47 = vor.u32 %v1010_v4, %v1009_v7 }
  0xc9   :  { %v1017_v37 = vor.u32 %v1016_v43, %v1015_v50  ;;  %vm1018_vm15 = vcmp.lt.s32.totalorder %v2174_v44, 1  ;;  %v337_v6 = vadd.f32 1.0, %v2129_v36  ;;  %v618_v45 = vsel %vm616_vm13, %v617_v61, %v2147_v51 }
  0xca   :  { %v929_v33 = vadd.s32 %v928_v38, %v924_v15  ;;  %vm1020_vm0 = vcmp.lt.s32.totalorder %v2174_v44, 3  ;;  %v344_v12 = vadd.f32 1.0, %v2133_v48  ;;  %v481_v42 = vsel %vm360_vm1, %v480_v40, %v2135_v25 }
  0xcb   :  { %v2223_v26 = vsel %vm360_vm1, %v482_v10, %v1790_v54  ;;  %v1027_v36 = vsel %vm1021_vm14, %v1014_v8, 920167782  ;;  %v790_v9 = vsub.s32 4294967266, %v2192_v28  ;;  %vm1019_vm2 = vcmp.lt.s32.totalorder %v2174_v44, 2 }
  0xcc   :  { %v930_v61 = vadd.s32 536870912, %v929_v33  ;;  %v1026_v48 = vsel %vm1018_vm15, %v2203_v0, %v2205_v35  ;;  %vm350_vm3 = vcmp.eq.s32.totalorder %v2106_v1, 0  ;;  %v619_v25 = vclz %v618_v45 }
  0xcd   :  { %v1028_v54 = vsel %vm1020_vm0, %v2208_v47, %v1027_v36  ;;  %v1031_v40 = vsel %vm1021_vm14, %v1017_v37, 1326507024  ;;  %v2239_v10 = vshll.u32 %v994_v5, 8  ;;  %v770_v24 = vadd.s32 %v1996_v16, %v1994_v63 }
  0xce   :  { %v786_v32 = vsub.s32 32, %v2192_v28  ;;  %v2244_v31 = vshrl.u32 %v930_v61, 30  ;;  %v1030_v7 = vsel %vm1018_vm15, %v2205_v35, %v2208_v47  ;;  %v345_v4 = vmul.f32 %v344_v12, %v1855_v27 }
  0xcf   :  { %v354_v41 = vxor.u32 2147483648, %v337_v6  ;;  %v1029_v15 = vsel %vm1019_vm2, %v1026_v48, %v1028_v54  ;;  %v1032_v2 = vsel %vm1020_vm0, %v1014_v8, %v1031_v40  ;;  %v2258_v63 = vsel %vm2184_vm8, %v1475_v11, %v481_v42 }
  0xd0   :  { %2690 = vst [vmem:[#allocation17_spill] sm:$0xff] %v2258_v63  ;;  %v791_v53 = vadd.s32 127, %v790_v9  ;;  %v932_v5 = vshll.u32 %v2244_v31, 30  ;;  %v1332_v27 = vadd.s32 4294967294, %v619_v25  ;;  %v1033_v50 = vsel %vm1019_vm2, %v1030_v7, %v1032_v2 }
  0xd1   :  { %v1035_v43 = vand.u32 65535, %v2239_v10  ;;  %v1036_v8 = vshrl.u32 %v2239_v10, 16  ;;  %v787_v38 = vshll.u32 %v2095_v34, %v2192_v28  ;;  %v788_v37 = vshrl.u32 %v770_v24, %v786_v32 }
  0xd2   :  { %v2270_v45 = vsub.s32 %v929_v33, %v932_v5  ;;  %v1060_v12 = vshrl.u32 %v1029_v15, 16  ;;  %v351_v42 = vxor.u32 2147483648, %v345_v4  ;;  %v2274_v36 = vsel %vm353_vm10, %v354_v41, %v345_v4 }
  0xd3   :  { %v1037_v9 = vand.u32 65535, %v1033_v50  ;;  %v1038_v61 = vshrl.u32 %v1033_v50, 16  ;;  %v2278_v48 = vmul.f32 %v2258_v63, %v2258_v63  ;;  %v792_v25 = vshll.u32 %v791_v53, 23 }
  0xd4   :  { %vm934_vm4 = vcmp.lt.s32.totalorder %v2270_v45, 0  ;;  %v935_v34 = vsub.s32 0, %v2270_v45  ;;  %vm1333_vm5 = vcmp.lt.s32.totalorder %v1332_v27, 0  ;;  %v789_v40 = vor.u32 %v788_v37, %v787_v38 }
  0xd5   :  { %v1039_v28 = vmul.u32 %v1037_v9, %v1035_v43  ;;  %v1040_v33 = vmul.u32 %v1038_v61, %v1035_v43  ;;  %v2282_v54 = vmul.u32 %v1037_v9, %v1036_v8  ;;  %v1059_v32 = vand.u32 65535, %v1029_v15 }
  0xd6   :  { %v936_v24 = vsel %vm934_vm4, %v935_v34, %v2270_v45  ;;  %v2285_v7 = vmul.u32 %v1060_v12, %v1035_v43  ;;  %v1042_v41 = vmul.u32 %v1038_v61, %v1036_v8  ;;  %v2290_v5 = vsel %vm350_vm3, %v337_v6, %v351_v42 }
  0xd7   :  { %v937_v4 = vclz %v936_v24  ;;  %v1043_v2 = vshll.u32 %v1040_v33, 16  ;;  %v1045_v53 = vshll.u32 %v2282_v54, 16  ;;  %v487_v50 = vmul.f32 -0.001358992, %v2278_v48 }
  0xd8   :  { %v494_v9 = vmul.f32 -0.00019511016, %v2278_v48  ;;  %v793_v20 = vor.u32 4788187, %v792_v25  ;;  %v2295_v38 = vsel %vm1333_vm5, 0, %v1332_v27  ;;  %v1061_v34 = vmul.u32 %v1059_v32, %v1035_v43 }
  0xd9   :  { %v1338_v15 = vadd.s32 4294967294, %v937_v4  ;;  %vm1047_vm6 = vc.u32 %v1039_v28, %v1043_v2  ;;  %v1049_v37 = vadd.s32 %v1043_v2, %v1039_v28  ;;  %v1063_v24 = vmul.u32 %v1059_v32, %v1036_v8 }
  0xda   :  { %v1048_v61 = vsel %vm1047_vm6, 1, %v1442_v52  ;;  %v1065_v17 = vshll.u32 %v2285_v7, 16  ;;  %v796_v16 = vcvt.s32.f32 %v789_v40  ;;  %v794_v42 = vand.u32 2147483647, %v793_v20 }
  0xdb   :  { %vm1339_vm11 = vcmp.lt.s32.totalorder %v1338_v15, 0  ;;  %v1050_v6 = vadd.s32 %v1048_v61, %v1042_v41  ;;  %vm1051_vm12 = vc.u32 %v1049_v37, %v1045_v53  ;;  %v1064_v11 = vmul.u32 %v1060_v12, %v1036_v8 }
  0xdc   :  { %v940_v14 = vsel %vm1339_vm11, 0, %v1338_v15  ;;  %v1052_v25 = vsel %vm1051_vm12, 1, %v1442_v52  ;;  %v607_v27 = vadd.s32 %v2021_v30, %v2016_v19  ;;  %v1044_v28 = vshrl.u32 %v1040_v33, 16 }
  0xdd   :  { %v945_v4 = vsub.s32 4294967266, %v940_v14  ;;  %v1054_v2 = vadd.s32 %v1052_v25, %v1050_v6  ;;  %v925_v43 = vadd.s32 %v2168_v39, %v2166_v46  ;;  %v941_v32 = vsub.s32 32, %v940_v14 }
  0xde   :  { %v1067_v63 = vshll.u32 %v1063_v24, 16  ;;  %vm1069_vm1 = vc.u32 %v1061_v34, %v1065_v17  ;;  %v627_v40 = vsub.s32 4294967266, %v2295_v38  ;;  %v1002_v20 = vshrl.u32 %v2679_v3, %v2170_v18 }
  0xdf   :  { %v946_v41 = vadd.s32 127, %v945_v4  ;;  %v1070_v8 = vsel %vm1069_vm1, 1, %v1442_v52  ;;  %vm194_vm13 = vcmp.lt.s32.totalorder %v1838_v55, 2  ;;  %v797_v19 = vmul.f32 %v796_v16, %v794_v42 }
  0xe0   :  { %v1023_v30 = vsel %vm1021_vm14, %v2208_v47, 2102212464  ;;  %v1071_v12 = vadd.s32 %v1065_v17, %v1061_v34  ;;  %v1072_v46 = vadd.s32 %v1070_v8, %v1064_v11  ;;  %vm349_vm7 = vcmp.lt.s32.totalorder %v2106_v1, 2 }
  0xe1   :  { %v1046_v39 = vshrl.u32 %v2282_v54, 16  ;;  %v1055_v33 = vadd.s32 %v1054_v2, %v1044_v28  ;;  %v1066_v53 = vshrl.u32 %v2285_v7, 16  ;;  %v1144_v18 = vand.u32 2139095040, %v2126_v57 }
  0xe2   :  { %v942_v15 = vshll.u32 %v2270_v45, %v940_v14  ;;  %v943_v37 = vshrl.u32 %v925_v43, %v941_v32  ;;  %v947_v61 = vshll.u32 %v946_v41, 23  ;;  %vm1073_vm9 = vc.u32 %v1071_v12, %v1067_v63  ;;  %v2691_v43 = vld [vmem:[#allocation15_spill] sm:$0xff] }
  0xe3   :  { %v1022_v47 = vsel %vm1018_vm15, %v1002_v20, %v2203_v0  ;;  %v1024_v11 = vsel %vm1020_vm0, %v2205_v35, %v1023_v30  ;;  %v1074_v17 = vsel %vm1073_vm9, 1, %v1442_v52  ;;  %v1145_v16 = vshrl.u32 %v1144_v18, 23 }
  0xe4   :  { %v623_v54 = vsub.s32 32, %v2295_v38  ;;  %v628_v7 = vadd.s32 127, %v627_v40  ;;  %v1068_v34 = vshrl.u32 %v1063_v24, 16  ;;  %v1076_v6 = vadd.s32 %v1074_v17, %v1072_v46 }
  0xe5   :  { %v488_v14 = vadd.f32 0.041655596, %v487_v50  ;;  %v2325_v45 = vadd.s32 %v1055_v33, %v1046_v39  ;;  %v2327_v42 = vadd.s32 %v1071_v12, %v1067_v63  ;;  %v1343_v25 = vadd.s32 4294967169, %v1145_v16 }
  0xe6   :  { %v944_v4 = vor.u32 %v943_v37, %v942_v15  ;;  %v948_v0 = vor.u32 4788187, %v947_v61  ;;  %v1025_v28 = vsel %vm1019_vm2, %v1022_v47, %v1024_v11  ;;  %v1077_v35 = vadd.s32 %v1076_v6, %v1066_v53 }
  0xe7   :  { %v495_v2 = vadd.f32 0.008332121, %v494_v9  ;;  %vm678_vm10 = vcmp.lt.s32.totalorder %v2691_v43, 0  ;;  %v798_v32 = vxor.u32 2147483648, %v797_v19  ;;  %v1151_v41 = vadd.s32 1, %v1343_v25 }
  0xe8   :  { %v624_v24 = vshll.u32 %v2147_v51, %v2295_v38  ;;  %v625_v50 = vshrl.u32 %v607_v27, %v623_v54  ;;  %v629_v40 = vshll.u32 %v628_v7, 23  ;;  %v1078_v20 = vadd.s32 %v1077_v35, %v1068_v34 }
  0xe9   :  { %v1079_v63 = vmul.u32 %v2239_v10, %v1025_v28  ;;  %vm1081_vm14 = vc.u32 %v2325_v45, %v2327_v42  ;;  %v1141_v44 = vand.u32 2147483647, %v2126_v57  ;;  %vm1152_vm15 = vcmp.gt.s32.totalorder %v1151_v41, 0 }
  0xea   :  { %v949_v8 = vand.u32 2147483647, %v948_v0  ;;  %v951_v9 = vcvt.s32.f32 %v944_v4  ;;  %v1082_v30 = vadd.s32 1, %v1078_v20  ;;  %v1153_v12 = vsel %vm1152_vm15, %v1151_v41, 0 }
  0xeb   :  { %v2342_v51 = vsel %vm194_vm13, %v2124_v49, %v2111_v21  ;;  %v2692_v38 = vand.u32 2147483647, %v2691_v43  ;;  %v799_v27 = vsel %vm678_vm10, %v798_v32, %v797_v19  ;;  %v1155_v46 = vand.u32 31, %v1153_v12 }
  0xec   :  { %v2356_v39 = vsel %vm349_vm7, %v2290_v5, %v2274_v36  ;;  %v489_v55 = vmul.f32 %v488_v14, %v2278_v48  ;;  %v2695_v21 = vsel %vm2184_vm8, 0, %v2223_v26  ;;  %v1083_v33 = vsel %vm1081_vm14, %v1082_v30, %v1078_v20 }
  0xed   :  { %vm2346_vm0 = vcmp.le.f32.partialorder %v2692_v38, 0.7853982  ;;  %v502_v49 = vadd.s32 3, %v2695_v21  ;;  %v496_v53 = vmul.f32 %v495_v2, %v2278_v48  ;;  %v626_v18 = vor.u32 %v625_v50, %v624_v24 }
  0xee   :  { %v1084_v15 = vadd.s32 %v1083_v33, %v1079_v63  ;;  %v2364_v19 = vsub.s32 32, %v1155_v46  ;;  %v630_v37 = vor.u32 4788187, %v629_v40  ;;  %v2369_v1 = vsel %vm2346_vm0, %v2691_v43, %v799_v27 }
  0xef   :  { %v952_v36 = vmul.f32 %v951_v9, %v949_v8  ;;  %v1148_v56 = vand.u32 8388607, %v1141_v44  ;;  %v1158_v26 = vshll.u32 %v2679_v3, %v1155_v46  ;;  %v1161_v61 = vshll.u32 %v2681_v13, %v1155_v46 }
  0xf0   :  { %v1085_v5 = vadd.s32 536870912, %v1084_v15  ;;  %v1164_v47 = vshll.u32 %v2682_v59, %v1155_v46  ;;  %v1159_v11 = vshrl.u32 %v2681_v13, %v2364_v19  ;;  %v1167_v17 = vshll.u32 %v2683_v29, %v1155_v46 }
  0xf1   :  { %v1168_v16 = vshrl.u32 %v2684_v22, %v2364_v19  ;;  %v1170_v54 = vshll.u32 %v2684_v22, %v1155_v46  ;;  %v1162_v34 = vshrl.u32 %v2682_v59, %v2364_v19  ;;  %v1165_v6 = vshrl.u32 %v2683_v29, %v2364_v19 }
  0xf2   :  { %v2382_v7 = vshrl.u32 %v1085_v5, 30  ;;  %v1171_v14 = vshrl.u32 %v2685_v60, %v2364_v19  ;;  %v490_v25 = vadd.f32 -0.4999988, %v489_v55  ;;  %v497_v13 = vadd.f32 -0.16666654, %v496_v53 }
  0xf3   :  { %v2392_v4 = vmul.f32 %v2369_v1, %v2369_v1  ;;  %v2394_v0 = vshrl.u32 %v1153_v12, 5  ;;  %v631_v22 = vand.u32 2147483647, %v630_v37  ;;  %v633_v28 = vcvt.s32.f32 %v626_v18 }
  0xf4   :  { %v953_v35 = vxor.u32 2147483648, %v952_v36  ;;  %v1087_v2 = vshll.u32 %v2382_v7, 30  ;;  %vm833_vm8 = vcmp.lt.s32.totalorder %v1905_v62, 0  ;;  %v1149_v59 = vor.u32 8388608, %v1148_v56 }
  0xf5   :  { %v1169_v29 = vor.u32 %v1168_v16, %v1167_v17  ;;  %v1172_v32 = vor.u32 %v1171_v14, %v1170_v54  ;;  %v2400_v60 = vor.u32 %v1159_v11, %v1158_v26  ;;  %v2402_v24 = vor.u32 %v1162_v34, %v1161_v61 }
  0xf6   :  { %v2398_v41 = vsub.s32 %v1084_v15, %v1087_v2  ;;  %v2404_v50 = vor.u32 %v1165_v6, %v1164_v47  ;;  %v812_v40 = vmul.f32 -0.00019511016, %v2392_v4  ;;  %v2696_v20 = vand.u32 2147483647, %v1905_v62 }
  0xf7   :  { %vm1173_vm3 = vcmp.lt.s32.totalorder %v2394_v0, 1  ;;  %vm1176_vm4 = vcmp.lt.s32.totalorder %v2394_v0, 4  ;;  %v954_v8 = vsel %vm833_vm8, %v953_v35, %v952_v36  ;;  %vm1175_vm6 = vcmp.lt.s32.totalorder %v2394_v0, 3 }
  0xf8   :  { %vm2409_vm2 = vcmp.le.f32.partialorder %v2696_v20, 0.7853982  ;;  %vm1089_vm5 = vcmp.lt.s32.totalorder %v2398_v41, 0  ;;  %v1090_v9 = vsub.s32 0, %v2398_v41  ;;  %v2420_v30 = vand.u32 3, %v502_v49 }
  0xf9   :  { %v1182_v12 = vsel %vm1176_vm4, %v1169_v29, 920167782  ;;  %v1186_v38 = vsel %vm1176_vm4, %v1172_v32, 1326507024  ;;  %v2426_v27 = vshll.u32 %v1149_v59, 8  ;;  %vm1174_vm11 = vcmp.lt.s32.totalorder %v2394_v0, 2 }
  0xfa   :  { %v1091_v46 = vsel %vm1089_vm5, %v1090_v9, %v2398_v41  ;;  %v1181_v55 = vsel %vm1173_vm3, %v2400_v60, %v2402_v24  ;;  %v1185_v21 = vsel %vm1173_vm3, %v2402_v24, %v2404_v50  ;;  %v2441_v49 = vsel %vm2409_vm2, %v1905_v62, %v954_v8 }
  0xfb   :  { %v1092_v33 = vclz %v1091_v46  ;;  %v1183_v53 = vsel %vm1175_vm6, %v2404_v50, %v1182_v12  ;;  %v1187_v18 = vsel %vm1175_vm6, %v1169_v29, %v1186_v38  ;;  %v2449_v15 = vmul.f32 %v490_v25, %v2278_v48 }
  0xfc   :  { %v2452_v37 = vmul.f32 %v497_v13, %v2278_v48  ;;  %v2454_v36 = vmul.f32 %v633_v28, %v631_v22  ;;  %v800_v56 = vsub.s32 4, %v2051_v23  ;;  %v805_v5 = vmul.f32 -0.001358992, %v2392_v4 }
  0xfd   :  { %v1341_v26 = vadd.s32 4294967294, %v1092_v33  ;;  %v1184_v61 = vsel %vm1174_vm11, %v1181_v55, %v1183_v53  ;;  %v1188_v47 = vsel %vm1174_vm11, %v1185_v21, %v1187_v18  ;;  %v813_v11 = vadd.f32 0.008332121, %v812_v40 }
  0xfe   :  { %v2464_v17 = vmul.f32 %v2441_v49, %v2441_v49  ;;  %v1080_v48 = vadd.s32 %v2327_v42, %v2325_v45  ;;  %v1192_v16 = vand.u32 65535, %v1188_v47  ;;  %v1190_v54 = vand.u32 65535, %v2426_v27 }
  0xff   :  { %vm1342_vm12 = vcmp.lt.s32.totalorder %v1341_v26, 0  ;;  %v1191_v34 = vshrl.u32 %v2426_v27, 16  ;;  %v1193_v6 = vshrl.u32 %v1188_v47, 16  ;;  %v2473_v14 = vsel %vm678_vm10, %v800_v56, %v2051_v23 }
 0x100   :  { %v1095_v25 = vsel %vm1342_vm12, 0, %v1341_v26  ;;  %v1214_v13 = vand.u32 65535, %v1184_v61  ;;  %v1215_v22 = vshrl.u32 %v1184_v61, 16  ;;  %v806_v28 = vadd.f32 0.041655596, %v805_v5 }
 0x101   :  { %v1096_v35 = vsub.s32 32, %v1095_v25  ;;  %v1097_v2 = vshll.u32 %v2398_v41, %v1095_v25  ;;  %v1100_v45 = vsub.s32 4294967266, %v1095_v25  ;;  %v814_v42 = vmul.f32 %v813_v11, %v2392_v4 }
 0x102   :  { %v960_v59 = vmul.f32 -0.001358992, %v2464_v17  ;;  %v967_v29 = vmul.f32 -0.00019511016, %v2464_v17  ;;  %v1194_v32 = vmul.u32 %v1192_v16, %v1190_v54  ;;  %v1195_v8 = vmul.u32 %v1193_v6, %v1190_v54 }
 0x103   :  { %v1098_v40 = vshrl.u32 %v1080_v48, %v1096_v35  ;;  %v1101_v20 = vadd.s32 127, %v1100_v45  ;;  %v1196_v23 = vmul.u32 %v1192_v16, %v1191_v34  ;;  %vm988_vm1 = vcmp.lt.s32.totalorder %v2007_v58, 0 }
 0x104   :  { %v1157_v9 = vshrl.u32 %v2679_v3, %v2364_v19  ;;  %v1197_v12 = vmul.u32 %v1193_v6, %v1191_v34  ;;  %v1217_v38 = vmul.u32 %v1215_v22, %v1190_v54  ;;  %v1218_v41 = vmul.u32 %v1214_v13, %v1191_v34 }
 0x105   :  { %v2699_v46 = vand.u32 2147483647, %v2007_v58  ;;  %v1099_v21 = vor.u32 %v1098_v40, %v1097_v2  ;;  %v1102_v33 = vshll.u32 %v1101_v20, 23  ;;  %v1198_v53 = vshll.u32 %v1195_v8, 16  ;;  %v2702_v2 = vld [vmem:[#allocation14_spill] sm:$0xff] }
 0x106   :  { %v1216_v18 = vmul.u32 %v1214_v13, %v1190_v54  ;;  %v961_v56 = vadd.f32 0.041655596, %v960_v59  ;;  %v1200_v5 = vshll.u32 %v1196_v23, 16  ;;  %v1219_v26 = vmul.u32 %v1215_v22, %v1191_v34 }
 0x107   :  { %vm2484_vm13 = vcmp.le.f32.partialorder %v2699_v46, 0.7853982  ;;  %v1220_v61 = vshll.u32 %v1217_v38, 16  ;;  %v1103_v47 = vor.u32 4788187, %v1102_v33  ;;  %v1106_v11 = vcvt.s32.f32 %v1099_v21 }
 0x108   :  { %vm1202_vm7 = vc.u32 %v1194_v32, %v1198_v53  ;;  %v1204_v3 = vadd.s32 %v1198_v53, %v1194_v32  ;;  %v968_v19 = vadd.f32 0.008332121, %v967_v29  ;;  %v1199_v48 = vshrl.u32 %v1195_v8, 16 }
 0x109   :  { %v1203_v16 = vsel %vm1202_vm7, 1, %v1442_v52  ;;  %v1222_v6 = vshll.u32 %v1218_v41, 16  ;;  %v1104_v25 = vand.u32 2147483647, %v1103_v47  ;;  %vm1224_vm10 = vc.u32 %v1216_v18, %v1220_v61 }
 0x10a   :  { %v1205_v35 = vadd.s32 %v1203_v16, %v1197_v12  ;;  %vm1206_vm9 = vc.u32 %v1204_v3, %v1200_v5  ;;  %v1178_v54 = vsel %vm1176_vm4, %v2404_v50, 2102212464  ;;  %v1225_v13 = vsel %vm1224_vm10, 1, %v1442_v52 }
 0x10b   :  { %v1207_v34 = vsel %vm1206_vm9, 1, %v1442_v52  ;;  %v1226_v22 = vadd.s32 %v1220_v61, %v1216_v18  ;;  %vm2667_vm14 = vcmp.lt.s32.totalorder %v2702_v2, 0  ;;  %v1107_v45 = vmul.f32 %v1106_v11, %v1104_v25 }
 0x10c   :  { %v1201_v59 = vshrl.u32 %v1196_v23, 16  ;;  %v1209_v29 = vadd.s32 %v1207_v34, %v1205_v35  ;;  %v1227_v32 = vadd.s32 %v1225_v13, %v1219_v26  ;;  %v969_v40 = vmul.f32 %v968_v19, %v2464_v17 }
 0x10d   :  { %v1177_v20 = vsel %vm1173_vm3, %v1157_v9, %v2400_v60  ;;  %v1221_v8 = vshrl.u32 %v1217_v38, 16  ;;  %vm1228_vm15 = vc.u32 %v1226_v22, %v1222_v6  ;;  %v1108_v50 = vxor.u32 2147483648, %v1107_v45 }
 0x10e   :  { %v1179_v12 = vsel %vm1175_vm6, %v2402_v24, %v1178_v54  ;;  %v1210_v46 = vadd.s32 %v1209_v29, %v1199_v48  ;;  %v1229_v21 = vsel %vm1228_vm15, 1, %v1442_v52  ;;  %v807_v23 = vmul.f32 %v806_v28, %v2392_v4 }
 0x10f   :  { %v815_v33 = vadd.f32 -0.16666654, %v814_v42  ;;  %v1223_v53 = vshrl.u32 %v1218_v41, 16  ;;  %v1231_v18 = vadd.s32 %v1229_v21, %v1227_v32  ;;  %v955_v5 = vsub.s32 4, %v2244_v31 }
 0x110   :  { %v1109_v60 = vsel %vm988_vm1, %v1108_v50, %v1107_v45  ;;  %v2507_v9 = vadd.s32 %v1210_v46, %v1201_v59  ;;  %v2509_v38 = vadd.s32 %v1226_v22, %v1222_v6  ;;  %v962_v26 = vmul.f32 %v961_v56, %v2464_v17 }
 0x111   :  { %v2515_v52 = vsel %vm2484_vm13, %v2007_v58, %v1109_v60  ;;  %v1180_v24 = vsel %vm1174_vm11, %v1177_v20, %v1179_v12  ;;  %v1232_v28 = vadd.s32 %v1231_v18, %v1221_v8  ;;  %v2520_v42 = vadd.f32 1.0, %v2449_v15 }
 0x112   :  { %v2703_v41 = vand.u32 2147483647, %v2702_v2  ;;  %v970_v47 = vadd.f32 -0.16666654, %v969_v40  ;;  %v1110_v56 = vsub.s32 4, %v2382_v7  ;;  %v1114_v11 = vmul.f32 %v2515_v52, %v2515_v52 }
 0x113   :  { %v635_v3 = vxor.u32 2147483648, %v2454_v36  ;;  %v803_v0 = vsel %vm2346_vm0, 0, %v2473_v14  ;;  %v808_v15 = vadd.f32 -0.4999988, %v807_v23  ;;  %v1233_v19 = vadd.s32 %v1232_v28, %v1223_v53  ;;  %v2706_v23 = vld [vmem:[#allocation17_spill] sm:$0xff] }
 0x114   :  { %vm2524_vm3 = vcmp.le.f32.partialorder %v2703_v41, 0.7853982  ;;  %v1115_v48 = vmul.f32 -0.001358992, %v1114_v11  ;;  %v1122_v16 = vmul.f32 -0.00019511016, %v1114_v11  ;;  %v1234_v6 = vmul.u32 %v2426_v27, %v1180_v24 }
 0x115   :  { %vm1236_vm4 = vc.u32 %v2507_v9, %v2509_v38  ;;  %v816_v25 = vmul.f32 %v815_v33, %v2392_v4  ;;  %v956_v35 = vsel %vm833_vm8, %v955_v5, %v2244_v31  ;;  %v963_v54 = vadd.f32 -0.4999988, %v962_v26 }
 0x116   :  { %v1237_v34 = vadd.s32 1, %v1233_v19  ;;  %v971_v10 = vmul.f32 %v970_v47, %v2464_v17  ;;  %v1111_v14 = vsel %vm988_vm1, %v1110_v56, %v2382_v7  ;;  %v1116_v13 = vadd.f32 0.041655596, %v1115_v48 }
 0x117   :  { %v1123_v22 = vadd.f32 0.008332121, %v1122_v16  ;;  %v499_v27 = vadd.f32 1.0, %v2452_v37  ;;  %v636_v45 = vsel %vm2667_vm14, %v635_v3, %v2454_v36  ;;  %v820_v59 = vadd.s32 3, %v803_v0 }
 0x118   :  { %v1238_v29 = vsel %vm1236_vm4, %v1237_v34, %v1233_v19  ;;  %v958_v31 = vsel %vm2409_vm2, 0, %v956_v35  ;;  %v1117_v32 = vmul.f32 %v1116_v13, %v1114_v11  ;;  %vm505_vm0 = vcmp.eq.s32.totalorder %v2420_v30, 0 }
 0x119   :  { %v1124_v40 = vmul.f32 %v1123_v22, %v1114_v11  ;;  %v1239_v20 = vadd.s32 %v1238_v29, %v1234_v6  ;;  %v809_v7 = vmul.f32 %v808_v15, %v2392_v4  ;;  %v817_v8 = vadd.f32 1.0, %v816_v25  ;;  %v2707_v6 = vld [vmem:[#allocation11_spill] sm:$0xff] }
 0x11a   :  { %v964_v50 = vmul.f32 %v963_v54, %v2464_v17  ;;  %v1113_v37 = vsel %vm2484_vm13, 0, %v1111_v14  ;;  %v972_v12 = vadd.f32 1.0, %v971_v10  ;;  %v1118_v36 = vadd.f32 -0.4999988, %v1117_v32  ;;  %v2709_v54 = vld [vmem:[#allocation13_spill] sm:$0xff] }
 0x11b   :  { %v1125_v46 = vadd.f32 -0.16666654, %v1124_v40  ;;  %v1240_v21 = vadd.s32 536870912, %v1239_v20  ;;  %v500_v63 = vmul.f32 %v499_v27, %v2706_v23  ;;  %vm508_vm8 = vcmp.eq.s32.totalorder %v2420_v30, 2 }
 0x11c   :  { %v509_v33 = vxor.u32 2147483648, %v2520_v42  ;;  %v975_v53 = vadd.s32 3, %v958_v31  ;;  %v1119_v18 = vmul.f32 %v1118_v36, %v1114_v11  ;;  %v1130_v4 = vadd.s32 3, %v1113_v37 }
 0x11d   :  { %v1126_v5 = vmul.f32 %v1125_v46, %v1114_v11  ;;  %v2560_v60 = vshrl.u32 %v1240_v21, 30  ;;  %vm504_vm2 = vcmp.lt.s32.totalorder %v2420_v30, 2  ;;  %v2566_v17 = vsel %vm2524_vm3, %v2702_v2, %v636_v45 }
 0x11e   :  { %v810_v55 = vadd.f32 1.0, %v809_v7  ;;  %v818_v26 = vmul.f32 %v817_v8, %v2369_v1  ;;  %v821_v24 = vand.u32 3, %v820_v59  ;;  %v965_v28 = vadd.f32 1.0, %v964_v50 }
 0x11f   :  { %v973_v41 = vmul.f32 %v972_v12, %v2441_v49  ;;  %v1127_v47 = vadd.f32 1.0, %v1126_v5  ;;  %v1242_v56 = vshll.u32 %v2560_v60, 30  ;;  %v506_v11 = vxor.u32 2147483648, %v500_v63  ;;  %v2708_v49 = vld [vmem:[#allocation12_spill] sm:$0xff] }
 0x120   :  { %v510_v3 = vsel %vm508_vm8, %v509_v33, %v500_v63  ;;  %v976_v0 = vand.u32 3, %v975_v53  ;;  %v1120_v15 = vadd.f32 1.0, %v1119_v18  ;;  %v2575_v19 = vmul.f32 %v2566_v17, %v2566_v17 }
 0x121   :  { %v1128_v48 = vmul.f32 %v1127_v47, %v2515_v52  ;;  %v1131_v1 = vand.u32 3, %v1130_v4  ;;  %v1243_v16 = vsub.s32 %v1239_v20, %v1242_v56  ;;  %vm191_vm5 = vweird.f32 %v2707_v6 }
 0x122   :  { %vm346_vm6 = vweird.f32 %v2708_v49  ;;  %vm823_vm11 = vcmp.eq.s32.totalorder %v821_v24, 0  ;;  %v824_v25 = vxor.u32 2147483648, %v818_v26  ;;  %vm826_vm12 = vcmp.eq.s32.totalorder %v821_v24, 2 }
 0x123   :  { %v827_v35 = vxor.u32 2147483648, %v810_v55  ;;  %vm501_vm1 = vweird.f32 %v2709_v54  ;;  %v979_v34 = vxor.u32 2147483648, %v973_v41  ;;  %v982_v10 = vxor.u32 2147483648, %v965_v28 }
 0x124   :  { %vm1244_vm13 = vcmp.lt.s32.totalorder %v1243_v16, 0  ;;  %v1245_v14 = vsub.s32 0, %v1243_v16  ;;  %vm978_vm7 = vcmp.eq.s32.totalorder %v976_v0, 0  ;;  %vm981_vm9 = vcmp.eq.s32.totalorder %v976_v0, 2 }
 0x125   :  { %v1134_v13 = vxor.u32 2147483648, %v1128_v48  ;;  %v1137_v52 = vxor.u32 2147483648, %v1120_v15  ;;  %v507_v22 = vsel %vm505_vm0, %v2520_v42, %v506_v11  ;;  %vm1133_vm10 = vcmp.eq.s32.totalorder %v1131_v1, 0 }
 0x126   :  { %vm1136_vm15 = vcmp.eq.s32.totalorder %v1131_v1, 2  ;;  %v1246_v27 = vsel %vm1244_vm13, %v1245_v14, %v1243_v16  ;;  %vm822_vm4 = vcmp.lt.s32.totalorder %v821_v24, 2  ;;  %v825_v45 = vsel %vm823_vm11, %v810_v55, %v824_v25 }
 0x127   :  { %v828_v59 = vsel %vm826_vm12, %v827_v35, %v818_v26  ;;  %v1247_v29 = vclz %v1246_v27  ;;  %v649_v31 = vmul.f32 -0.00019511016, %v2575_v19  ;;  %vm977_vm8 = vcmp.lt.s32.totalorder %v976_v0, 2 }
 0x128   :  { %v980_v32 = vsel %vm978_vm7, %v965_v28, %v979_v34  ;;  %v983_v40 = vsel %vm981_vm9, %v982_v10, %v973_v41  ;;  %vm1132_vm14 = vcmp.lt.s32.totalorder %v1131_v1, 2  ;;  %v1135_v20 = vsel %vm1133_vm10, %v1120_v15, %v1134_v13 }
 0x129   :  { %v1138_v7 = vsel %vm1136_vm15, %v1137_v52, %v1128_v48  ;;  %v1344_v8 = vadd.s32 4294967294, %v1247_v29  ;;  %v511_v42 = vsel %vm504_vm2, %v507_v22, %v510_v3  ;;  %v642_v50 = vmul.f32 -0.001358992, %v2575_v19 }
 0x12a   :  { %vm819_vm0 = vweird.f32 %v2691_v43  ;;  %v829_v37 = vsel %vm822_vm4, %v825_v45, %v828_v59  ;;  %vm974_vm11 = vweird.f32 %v1905_v62  ;;  %v984_v12 = vsel %vm977_vm8, %v980_v32, %v983_v40 }
 0x12b   :  { %v1235_v36 = vadd.s32 %v2509_v38, %v2507_v9  ;;  %vm1345_vm12 = vcmp.lt.s32.totalorder %v1344_v8, 0  ;;  %v650_v46 = vadd.f32 0.008332121, %v649_v31  ;;  %vm1129_vm13 = vweird.f32 %v2007_v58 }
 0x12c   :  { %v1139_v21 = vsel %vm1132_vm14, %v1135_v20, %v1138_v7  ;;  %v1250_v23 = vsel %vm1345_vm12, 0, %v1344_v8  ;;  %v202_v43 = vsel %vm191_vm5, nan, %v2342_v51  ;;  %v357_v62 = vsel %vm346_vm6, nan, %v2356_v39  ;;  %v2710_v39 = vld [vmem:[#allocation16_spill] sm:$0xff] }
 0x12d   :  { %v1251_v63 = vsub.s32 32, %v1250_v23  ;;  %v1252_v30 = vshll.u32 %v1243_v16, %v1250_v23  ;;  %v1255_v33 = vsub.s32 4294967266, %v1250_v23  ;;  %v830_v53 = vsel %vm819_vm0, nan, %v829_v37 }
 0x12e   :  { %v985_v18 = vsel %vm974_vm11, nan, %v984_v12  ;;  %v512_v9 = vsel %vm501_vm1, nan, %v511_v42  ;;  %v1140_v38 = vsel %vm1129_vm13, nan, %v1139_v21  ;;  %v643_v4 = vadd.f32 0.041655596, %v642_v50 }
 0x12f   :  { %v1253_v58 = vshrl.u32 %v1235_v36, %v1251_v63  ;;  %v1256_v5 = vadd.s32 127, %v1255_v33  ;;  %v651_v55 = vmul.f32 %v650_v46, %v2575_v19  ;;  %v1296_v28 = vmul.f32 %v830_v53, %v202_v43 }
 0x130   :  { %v1297_v41 = vmul.f32 %v985_v18, %v357_v62  ;;  %v1298_v51 = vmul.f32 %v1140_v38, %v512_v9  ;;  %v637_v11 = vsub.s32 4, %v2710_v39  ;;  %v644_v3 = vmul.f32 %v643_v4, %v2575_v19 }
 0x131   :  { %v1254_v26 = vor.u32 %v1253_v58, %v1252_v30  ;;  %v1257_v24 = vshll.u32 %v1256_v5, 23  ;;  %1300 = vst [vmem:[#allocation7] sm:$0xff] %v1296_v28  ;;  %v652_v0 = vadd.f32 -0.16666654, %v651_v55  ;;  %vm2711_vm14 = vcmp.lt.s32.totalorder %v2702_v2, 0 }
 0x132   :  { %1301 = vst [vmem:[#allocation7 + $0x8] sm:$0xff] %v1297_v41  ;;  %v638_v1 = vsel %vm2711_vm14, %v637_v11, %v2710_v39  ;;  %vm1143_vm2 = vcmp.lt.s32.totalorder %v2126_v57, 0  ;;  %v1265_v16 = vsub.s32 4, %v2560_v60  ;;  %v645_v6 = vadd.f32 -0.4999988, %v644_v3 }
 0x133   :  { %v1258_v47 = vor.u32 4788187, %v1257_v24  ;;  %v1261_v56 = vcvt.s32.f32 %v1254_v26  ;;  %1302 = vst [vmem:[#allocation7 + $0x10] sm:$0xff] %v1298_v51  ;;  %v653_v49 = vmul.f32 %v652_v0, %v2575_v19  ;;  %vm2614_vm5 = vcmp.le.f32.partialorder %v1141_v44, 0.7853982 }
 0x134   :  { %v640_v54 = vsel %vm2524_vm3, 0, %v638_v1  ;;  %v1266_v10 = vsel %vm1143_vm2, %v1265_v16, %v2560_v60  ;;  %v646_v13 = vmul.f32 %v645_v6, %v2575_v19  ;;  %vm656_vm9 = vweird.f32 %v2702_v2 }
 0x135   :  { %v1259_v15 = vand.u32 2147483647, %v1258_v47  ;;  %v654_v52 = vadd.f32 1.0, %v653_v49  ;;  %v657_v27 = vadd.s32 3, %v640_v54  ;;  %v1268_v44 = vsel %vm2614_vm5, 0, %v1266_v10 }
 0x136   :  { %v647_v29 = vadd.f32 1.0, %v646_v13  ;;  %v1285_v40 = vadd.s32 3, %v1268_v44  ;;  %vm1284_vm4 = vweird.f32 %v2126_v57 }
 0x137   :  { %v1262_v48 = vmul.f32 %v1261_v56, %v1259_v15  ;;  %v655_v61 = vmul.f32 %v654_v52, %v2566_v17  ;;  %v658_v60 = vand.u32 3, %v657_v27 }
 0x138   :  { %v664_v42 = vxor.u32 2147483648, %v647_v29  ;;  %v1286_v37 = vand.u32 3, %v1285_v40 }
 0x139   :  { %v1263_v35 = vxor.u32 2147483648, %v1262_v48  ;;  %v661_v8 = vxor.u32 2147483648, %v655_v61  ;;  %vm660_vm3 = vcmp.eq.s32.totalorder %v658_v60, 0  ;;  %vm663_vm6 = vcmp.eq.s32.totalorder %v658_v60, 2 }
 0x13a   :  { %vm659_vm1 = vcmp.lt.s32.totalorder %v658_v60, 2  ;;  %v665_v21 = vsel %vm663_vm6, %v664_v42, %v655_v61  ;;  %vm1291_vm7 = vcmp.eq.s32.totalorder %v1286_v37, 2  ;;  %vm1288_vm10 = vcmp.eq.s32.totalorder %v1286_v37, 0 }
 0x13b   :  { %v1264_v34 = vsel %vm1143_vm2, %v1263_v35, %v1262_v48  ;;  %v662_v46 = vsel %vm660_vm3, %v647_v29, %v661_v8  ;;  %vm1287_vm15 = vcmp.lt.s32.totalorder %v1286_v37, 2 }
 0x13c   :  { %v1267_v14 = vsel %vm2614_vm5, %v2126_v57, %v1264_v34  ;;  %v666_v33 = vsel %vm659_vm1, %v662_v46, %v665_v21 }
 0x13d   :  { %v1269_v22 = vmul.f32 %v1267_v14, %v1267_v14  ;;  %v667_v53 = vsel %vm656_vm9, nan, %v666_v33 }
 0x13f   :  { %v1270_v45 = vmul.f32 -0.001358992, %v1269_v22  ;;  %v1277_v59 = vmul.f32 -0.00019511016, %v1269_v22 }
 0x141   :  { %v1271_v31 = vadd.f32 0.041655596, %v1270_v45  ;;  %v1278_v32 = vadd.f32 0.008332121, %v1277_v59 }
 0x143   :  { %v1272_v20 = vmul.f32 %v1271_v31, %v1269_v22  ;;  %v1279_v7 = vmul.f32 %v1278_v32, %v1269_v22 }
 0x145   :  { %v1273_v19 = vadd.f32 -0.4999988, %v1272_v20  ;;  %v1280_v50 = vadd.f32 -0.16666654, %v1279_v7 }
 0x147   :  { %v1274_v12 = vmul.f32 %v1273_v19, %v1269_v22  ;;  %v1281_v36 = vmul.f32 %v1280_v50, %v1269_v22 }
 0x149   :  { %v1275_v23 = vadd.f32 1.0, %v1274_v12  ;;  %v1282_v17 = vadd.f32 1.0, %v1281_v36 }
 0x14b   :  { %v1283_v63 = vmul.f32 %v1282_v17, %v1267_v14  ;;  %v1292_v30 = vxor.u32 2147483648, %v1275_v23 }
 0x14d   :  { %v1289_v43 = vxor.u32 2147483648, %v1283_v63  ;;  %v1293_v62 = vsel %vm1291_vm7, %v1292_v30, %v1283_v63 }
 0x14f   :  { %v1290_v18 = vsel %vm1288_vm10, %v1275_v23, %v1289_v43 }
 0x150   :  { %v1294_v9 = vsel %vm1287_vm15, %v1290_v18, %v1293_v62 }
 0x151   :  { %v1295_v38 = vsel %vm1284_vm4, nan, %v1294_v9 }
 0x152   :  { %v1299_v58 = vmul.f32 %v1295_v38, %v667_v53 }
 0x154   :  { %1303 = vst [vmem:[#allocation7 + $0x18] sm:$0xff] %v1299_v58 }
 0x155   :  { %1314 = dma.vmem_to_hbm [thread:$0]  %s1310_s1, 512, %s1312_s21, [#allocation4]  }
 0x156   :  { %1432 = dma.done.wait [#allocation4], 512  }
 0x157   :  { %1433 = vsyncadd [#allocation4], 4294966784 }
 0x158   :  { %1319 = vsyncpa [#allocation3], 1 }
 0x159   :  { %1320 = vsyncpa [#allocation6], 1 }
 0x15a   :  { %1321 = vsyncpa [#allocation4], 1 }

</bundles_post_ra>
